<compile_context>
chip_gen: v6e
topology: v6e:2x2x1
jax: 0.10.0
libtpu: 0.0.40
codegen_flags: <defaults>
</compile_context>

<pallas_src>
import jax
import jax.numpy as jnp
from jax.experimental import pallas as pl
from jax.experimental.pallas import tpu as pltpu

LANE_TILE = 128      # output-column tile (pooled positions, padded to 128)
POOL_CORNERS = 4     # 2x2 maxpool window positions fused into conv1


# ---------------------------------------------------------------------------
# Kernel 1: conv1 (6x6, stride 2) + bias + PReLU + 2x2 maxpool
# ---------------------------------------------------------------------------
def _conv1_pool_kernel(p_ref, w_ref, b_ref, a_ref, o_ref):
    """One wide GEMM over all 4 pooling corners, then max over corner lane slices.

    p_ref : (1, 1, K1, 4*TN) bf16  corner im2col patches; lane = corner*TN + col
    w_ref : (1, Cout, K1)    bf16  flattened conv1 weight (branch-stacked)
    b_ref : (1, Cout, 1)     f32   conv1 bias
    a_ref : (G,)             f32   PReLU slopes in SMEM (one per branch)
    o_ref : (1, 1, Cout, TN) f32   pooled activations for this 128-col tile
    """
    g = pl.program_id(0)
    # Single MXU fill/drain for all 4 corners.
    acc = jnp.dot(w_ref[0], p_ref[0, 0], preferred_element_type=jnp.float32)
    # Hoisted bias + PReLU epilogue (applied once, before the max: exact for any alpha).
    acc = acc + b_ref[0]
    alpha = a_ref[g]
    act = jnp.where(acc > 0.0, acc, alpha * acc)
    # Fused 2x2 maxpool: max over the 4 corner slices (128-aligned static lane slices).
    tn = o_ref.shape[-1]
    m = act[:, 0:tn]
    for c in range(1, POOL_CORNERS):
        m = jnp.maximum(m, act[:, c * tn:(c + 1) * tn])
    o_ref[0, 0] = m


# ---------------------------------------------------------------------------
# Kernel 2: conv2 (3x3, stride 2) + bias + PReLU + linear head, fused
# ---------------------------------------------------------------------------
def _conv2_head_kernel(p2_ref, w2t_ref, b2_ref, a2_ref, hw_ref, hb_ref, o_ref):
    """Per-branch conv2 + PReLU + partial head matmul, accumulated over the branch grid.

    p2_ref : (1, P, B, K2)      bf16  conv2 patches (P = oh*ow output positions)
    w2t_ref: (1, K2, Cmid)      bf16  conv2 weight, transposed
    b2_ref : (1, 1, Cmid)       f32   conv2 bias (row)
    a2_ref : (G,)               f32   PReLU slopes in SMEM
    hw_ref : (1, P, Cmid, N)    f32   head weight slab, reordered to [pos, c, n]
    hb_ref : (1, N)             f32   head bias (added once, at branch 0)
    o_ref  : (B, N)             f32   accumulated head output (resident across grid)
    """
    g = pl.program_id(0)
    w2t = w2t_ref[0]                                   # (K2, Cmid)
    b2 = b2_ref[0]                                     # (1, Cmid)
    alpha = a2_ref[g]
    n_pos = p2_ref.shape[1]

    acc = jnp.zeros(o_ref.shape, jnp.float32)          # (B, N)
    for pos in range(n_pos):
        a = jnp.dot(p2_ref[0, pos], w2t,
                    preferred_element_type=jnp.float32)        # (B, Cmid)
        a = a + b2
        a = jnp.where(a > 0.0, a, alpha * a)                    # conv2 PReLU
        acc = acc + jnp.dot(a, hw_ref[0, pos],
                            preferred_element_type=jnp.float32)  # (B, N)

    @pl.when(g == 0)
    def _():
        o_ref[...] = acc + hb_ref[...]

    @pl.when(g > 0)
    def _():
        o_ref[...] = o_ref[...] + acc


# ---------------------------------------------------------------------------
# pallas_call wrappers
# ---------------------------------------------------------------------------
def conv1_pool(patches, w1, b1, a1):
    """patches: (G, T, K1, 4*TN) bf16 -> pooled (G, T, Cout, TN) f32."""
    G, T, K1, L = patches.shape
    Cout = w1.shape[1]
    tn = L // POOL_CORNERS
    return pl.pallas_call(
        _conv1_pool_kernel,
        out_shape=jax.ShapeDtypeStruct((G, T, Cout, tn), jnp.float32),
        grid=(G, T),
        in_specs=[
            pl.BlockSpec((1, 1, K1, L), lambda g, t: (g, t, 0, 0)),
            pl.BlockSpec((1, Cout, K1), lambda g, t: (g, 0, 0)),
            pl.BlockSpec((1, Cout, 1), lambda g, t: (g, 0, 0)),
            pl.BlockSpec(memory_space=pltpu.MemorySpace.SMEM),
        ],
        out_specs=pl.BlockSpec((1, 1, Cout, tn), lambda g, t: (g, t, 0, 0)),
        compiler_params=pltpu.CompilerParams(
            dimension_semantics=("parallel", "parallel")),
    )(patches, w1, b1, a1)


def conv2_head(p2b, w2t, b2r, a2, hw, hb):
    """Fused conv2+PReLU+Linear head; accumulates over the branch grid axis."""
    G, P, B, K2 = p2b.shape
    Cmid = w2t.shape[2]
    N = hw.shape[-1]
    return pl.pallas_call(
        _conv2_head_kernel,
        out_shape=jax.ShapeDtypeStruct((B, N), jnp.float32),
        grid=(G,),
        in_specs=[
            pl.BlockSpec((1, P, B, K2), lambda g: (g, 0, 0, 0)),
            pl.BlockSpec((1, K2, Cmid), lambda g: (g, 0, 0)),
            pl.BlockSpec((1, 1, Cmid), lambda g: (g, 0, 0)),
            pl.BlockSpec(memory_space=pltpu.MemorySpace.SMEM),
            pl.BlockSpec((1, P, Cmid, N), lambda g: (g, 0, 0, 0)),
            pl.BlockSpec((1, N), lambda g: (0, 0)),
        ],
        out_specs=pl.BlockSpec((B, N), lambda g: (0, 0)),
        compiler_params=pltpu.CompilerParams(
            dimension_semantics=("arbitrary",)),
    )(p2b, w2t, b2r, a2, hw, hb)


# ---------------------------------------------------------------------------
# im2col glue (XLA): everything is built in bf16, lane-padded and corner-packed
# so the kernels never need in-kernel gathers / transposes / reshapes.
# ---------------------------------------------------------------------------
def conv1_pool_corner_patches(xb, k=6, s=2, pool=2, lane_tile=LANE_TILE):
    """xb: (G, B, C, H, W) bf16 -> (G, T, C*k*k, 4*lane_tile) corner-packed patches.

    Corner (p, q) column (b, oh, ow) holds the conv1 patch of output position
    (pool*oh + p, pool*ow + q); max over corners == MaxPool2d(pool) of conv1 output.
    Row ordering c*k*k + i*k + j matches torch weight.reshape(Cout, -1).
    Columns are padded from Np = B*ph*pw up to T*lane_tile; lane layout of the last
    axis is corner*lane_tile + col_within_tile.
    """
    G, B, C, H, W = xb.shape
    oh = (H - k) // s + 1
    ow = (W - k) // s + 1
    ph, pw = oh // pool, ow // pool
    Np = B * ph * pw
    K1 = C * k * k

    corners = []
    for p in range(pool):
        for q in range(pool):
            slabs = []
            for i in range(k):
                for j in range(k):
                    r0 = s * p + i
                    c0 = s * q + j
                    slabs.append(xb[:, :, :,
                                    r0:r0 + s * pool * (ph - 1) + 1:s * pool,
                                    c0:c0 + s * pool * (pw - 1) + 1:s * pool])  # (G,B,C,ph,pw)
            t = jnp.stack(slabs, axis=3)                 # (G, B, C, k*k, ph, pw)
            t = t.transpose(0, 2, 3, 1, 4, 5)            # (G, C, k*k, B, ph, pw)
            corners.append(t.reshape(G, K1, Np))
    pat = jnp.stack(corners, axis=1)                     # (G, 4, K1, Np)

    Np_pad = ((Np + lane_tile - 1) // lane_tile) * lane_tile
    T = Np_pad // lane_tile
    pat = jnp.pad(pat, ((0, 0), (0, 0), (0, 0), (0, Np_pad - Np)))
    pat = pat.reshape(G, pool * pool, K1, T, lane_tile)
    pat = pat.transpose(0, 3, 2, 1, 4)                   # (G, T, K1, 4, TN)
    pat = pat.reshape(G, T, K1, pool * pool * lane_tile)
    return pat, ph, pw, Np, T


def conv2_head_patches(pooled5, k=3, s=2):
    """pooled5: (G, C, B, H, W) f32 -> (G, oh*ow, B, C*k*k) bf16 per-position patches."""
    G, C, B, H, W = pooled5.shape
    oh = (H - k) // s + 1
    ow = (W - k) // s + 1
    slabs = []
    for i in range(k):
        for j in range(k):
            slabs.append(pooled5[:, :, :,
                                 i:i + s * (oh - 1) + 1:s,
                                 j:j + s * (ow - 1) + 1:s])   # (G, C, B, oh, ow)
    t = jnp.stack(slabs, axis=2)                              # (G, C, k*k, B, oh, ow)
    t = t.transpose(0, 4, 5, 3, 1, 2)                         # (G, oh, ow, B, C, k*k)
    t = t.reshape(G, oh * ow, B, C * k * k)                   # pos = oh*ow, K = c*9+ij
    return t.astype(jnp.bfloat16), oh, ow


# ---------------------------------------------------------------------------
# Encoder forward (matches PyTorch module semantics)
# ---------------------------------------------------------------------------
def encoder_forward(params, x):
    # x: (B, C, D, H, W)
    B, C, D, H, W = x.shape
    G = 3

    # PyTorch branch views (permute + reshape to NCHW with 32 input channels).
    x1 = jnp.transpose(x, (0, 1, 4, 2, 3)).reshape(B, C * W, D, H)
    x2 = jnp.transpose(x, (0, 1, 3, 2, 4)).reshape(B, C * H, D, W)
    x3 = x.reshape(B, C * D, H, W)
    # Cast to bf16 BEFORE the im2col so patch extraction / HBM traffic is bf16.
    xb = jnp.stack([x1, x2, x3], axis=0).astype(jnp.bfloat16)   # (3, B, 32, 32, 32)

    enc = [params["enc1"], params["enc2"], params["enc3"]]
    w1 = jnp.stack([p["w1"].reshape(p["w1"].shape[0], -1) for p in enc]).astype(jnp.bfloat16)  # (3,8,1152)
    b1 = jnp.stack([p["b1"] for p in enc])[..., None]                  # (3, 8, 1)
    a1 = jnp.stack([p["a1"] for p in enc])                             # (3,)
    w2t = jnp.stack([p["w2"].reshape(p["w2"].shape[0], -1).T
                     for p in enc]).astype(jnp.bfloat16)               # (3, 72, 16)
    b2r = jnp.stack([p["b2"] for p in enc])[:, None, :]                # (3, 1, 16)
    a2 = jnp.stack([p["a2"] for p in enc])                             # (3,)

    # conv1 + PReLU + 2x2 maxpool (one wide GEMM per 128-lane tile), lane-padded.
    pat, ph, pw, Np, T = conv1_pool_corner_patches(xb, k=6, s=2, pool=2)
    pooled_t = conv1_pool(pat, w1, b1, a1)                             # (3, T, 8, 128)
    Cmid = pooled_t.shape[2]
    pooled = (pooled_t.transpose(0, 2, 1, 3)
                      .reshape(G, Cmid, T * LANE_TILE)[:, :, :Np])     # (3, 8, B*7*7)
    pooled5 = pooled.reshape(G, Cmid, B, ph, pw)                       # (3, 8, B, 7, 7)

    # conv2 + PReLU fused with the linear head in a single pallas_call.
    p2b, oh2, ow2 = conv2_head_patches(pooled5, k=3, s=2)              # (3, 9, B, 72)
    n_out = params["head_w"].shape[1]
    # head_w rows are ordered [branch, channel, position] (torch cat + view order);
    # reorder the per-branch slab to [position, channel, n] for the per-pos partial GEMMs.
    hw = (params["head_w"]
          .reshape(G, Cmid * 2, oh2 * ow2, n_out)                      # (3, 16, 9, 64)
          .transpose(0, 2, 1, 3))                                      # (3, 9, 16, 64)
    hb = params["head_b"].reshape(1, n_out)
    return conv2_head(p2b, w2t, b2r, a2, hw, hb)                       # (B, 64)


# ---------------------------------------------------------------------------
# Deterministic parameter init (same shapes as the torch module, not a ckpt).
# NOTE: head_w is stored as (in_features, out_features); torch nn.Linear stores
# (out, in), so loading a real checkpoint requires a transpose.
# ---------------------------------------------------------------------------
def init_params(key, output_size=64):
    def conv_init(k, cout, cin, kh, kw):
        fan_in = cin * kh * kw
        bound = 1.0 / (fan_in ** 0.5)
        kw_, kb_ = jax.random.split(k)
        w = jax.random.uniform(kw_, (cout, cin, kh, kw), jnp.float32, -bound, bound)
        b = jax.random.uniform(kb_, (cout,), jnp.float32, -bound, bound)
        return w, b

    def enc_init(k):
        k1, k2 = jax.random.split(k)
        w1, b1 = conv_init(k1, 8, 32, 6, 6)
        w2, b2 = conv_init(k2, 16, 8, 3, 3)
        return dict(w1=w1, b1=b1, a1=jnp.float32(0.25),   # nn.PReLU() default slope
                    w2=w2, b2=b2, a2=jnp.float32(0.25))

    k1, k2, k3, k4 = jax.random.split(key, 4)
    fc_in = 16 * 3 * 3 * 3  # 432 = first_fc_in_features * 3
    bound = 1.0 / (fc_in ** 0.5)
    kwh, kbh = jax.random.split(k4)
    head_w = jax.random.uniform(kwh, (fc_in, output_size), jnp.float32, -bound, bound)
    head_b = jax.random.uniform(kbh, (output_size,), jnp.float32, -bound, bound)
    return dict(enc1=enc_init(k1), enc2=enc_init(k2), enc3=enc_init(k3),
                head_w=head_w, head_b=head_b)


if __name__ == "__main__":
    key = jax.random.PRNGKey(0)
    pkey, xkey = jax.random.split(key)
    params = init_params(pkey, output_size=64)

    # Voxel input: (B, C=1, D=32, H=32, W=32) so C*W = C*H = C*D = 32 matches the
    # fixed Conv2d in_channels=32 of the module.
    B = 2
    x = jax.random.uniform(xkey, (B, 1, 32, 32, 32), dtype=jnp.float32)

    out = jax.jit(encoder_forward)(params, x)
    out = jax.block_until_ready(out)
    assert out.shape == (B, 64), out.shape
    assert jnp.isfinite(out).all()
    print("KERNEL_OK")
</pallas_src>

<mosaic_0001>
module attributes {stable_mosaic.version = 11 : i64} {
  func.func @_conv1_pool_kernel(%arg0: i32, %arg1: i32, %arg2: memref<1x1x1152x512xbf16, #tpu.memory_space<vmem>>, %arg3: memref<1x8x1152xbf16, #tpu.memory_space<vmem>>, %arg4: memref<1x8x1xf32, #tpu.memory_space<vmem>>, %arg5: memref<3xf32, #tpu.memory_space<smem>>, %arg6: memref<1x1x8x128xf32, #tpu.memory_space<vmem>>) attributes {dimension_semantics = [#tpu.dimension_semantics<parallel>, #tpu.dimension_semantics<parallel>], iteration_bounds = array<i64: 3, 1>, scalar_prefetch = 0 : i64, scratch_operands = 0 : i64, tpu.core_type = #tpu.core_type<tc>, window_params = [{transform_indices = @transform_0, window_bounds = array<i64: 1, 1, 1152, 512>}, {transform_indices = @transform_1, window_bounds = array<i64: 1, 8, 1152>}, {transform_indices = @transform_2, window_bounds = array<i64: 1, 8, 1>}, {transform_indices = @transform_3, window_bounds = array<i64: 3>}, {transform_indices = @transform_4, window_bounds = array<i64: 1, 1, 8, 128>}]} {
    %c0 = arith.constant 0 : index
    %c0_0 = arith.constant 0 : index
    %c0_1 = arith.constant 0 : index
    %0 = vector.load %arg3[%c0, %c0_0, %c0_1] : memref<1x8x1152xbf16, #tpu.memory_space<vmem>>, vector<1x8x1152xbf16>
    %1 = vector.shape_cast %0 : vector<1x8x1152xbf16> to vector<8x1152xbf16>
    %c0_2 = arith.constant 0 : index
    %c0_3 = arith.constant 0 : index
    %c0_4 = arith.constant 0 : index
    %c0_5 = arith.constant 0 : index
    %2 = vector.load %arg2[%c0_2, %c0_3, %c0_4, %c0_5] : memref<1x1x1152x512xbf16, #tpu.memory_space<vmem>>, vector<1x1x1152x512xbf16>
    %3 = vector.shape_cast %2 : vector<1x1x1152x512xbf16> to vector<1152x512xbf16>
    %cst = arith.constant dense<0.000000e+00> : vector<8x512xf32>
    %4 = tpu.matmul %1, %3, %cst {dimension_numbers = #tpu.dot_dimension_numbers<[1], [0], [0], [1], [0, 0, 1, 1], [], []>} : vector<8x1152xbf16>, vector<1152x512xbf16>, vector<8x512xf32> -> vector<8x512xf32>
    %c0_6 = arith.constant 0 : index
    %c0_7 = arith.constant 0 : index
    %c0_8 = arith.constant 0 : index
    %5 = vector.load %arg4[%c0_6, %c0_7, %c0_8] : memref<1x8x1xf32, #tpu.memory_space<vmem>>, vector<1x8x1xf32>
    %6 = vector.shape_cast %5 : vector<1x8x1xf32> to vector<8x1xf32>
    %7 = vector.broadcast %6 : vector<8x1xf32> to vector<8x512xf32>
    %8 = arith.addf %4, %7 : vector<8x512xf32>
    %9 = arith.index_cast %arg0 : i32 to index
    %10 = memref.load %arg5[%9] : memref<3xf32, #tpu.memory_space<smem>>
    %cst_9 = arith.constant 0.000000e+00 : f32
    %11 = vector.broadcast %cst_9 : f32 to vector<8x512xf32>
    %12 = arith.cmpf ogt, %8, %11 : vector<8x512xf32>
    %13 = vector.broadcast %10 : f32 to vector<8x512xf32>
    %14 = arith.mulf %13, %8 : vector<8x512xf32>
    %15 = arith.select %12, %8, %14 : vector<8x512xi1>, vector<8x512xf32>
    %16 = vector.extract_strided_slice %15 {offsets = [0, 0], sizes = [8, 128], strides = [1, 1]} : vector<8x512xf32> to vector<8x128xf32>
    %17 = vector.extract_strided_slice %15 {offsets = [0, 128], sizes = [8, 128], strides = [1, 1]} : vector<8x512xf32> to vector<8x128xf32>
    %18 = arith.maximumf %16, %17 : vector<8x128xf32>
    %19 = vector.extract_strided_slice %15 {offsets = [0, 256], sizes = [8, 128], strides = [1, 1]} : vector<8x512xf32> to vector<8x128xf32>
    %20 = arith.maximumf %18, %19 : vector<8x128xf32>
    %21 = vector.extract_strided_slice %15 {offsets = [0, 384], sizes = [8, 128], strides = [1, 1]} : vector<8x512xf32> to vector<8x128xf32>
    %22 = arith.maximumf %20, %21 : vector<8x128xf32>
    %c0_10 = arith.constant 0 : index
    %c0_11 = arith.constant 0 : index
    %c0_12 = arith.constant 0 : index
    %c0_13 = arith.constant 0 : index
    %23 = vector.load %arg6[%c0_10, %c0_11, %c0_12, %c0_13] : memref<1x1x8x128xf32, #tpu.memory_space<vmem>>, vector<1x1x8x128xf32>
    %24 = vector.shape_cast %23 : vector<1x1x8x128xf32> to vector<8x128xf32>
    %25 = vector.shape_cast %22 : vector<8x128xf32> to vector<1x1x8x128xf32>
    tpu.vector_store %arg6[%c0_10, %c0_11, %c0_12, %c0_13], %25 {strides = array<i32>} : memref<1x1x8x128xf32, #tpu.memory_space<vmem>>, vector<1x1x8x128xf32>,
    return
  }
  func.func @transform_0(%arg0: i32, %arg1: i32) -> (i32, i32, i32, i32) {
    %c0_i32 = arith.constant 0 : i32
    %c0_i32_0 = arith.constant 0 : i32
    %c0_i32_1 = arith.constant 0 : i32
    return %arg0, %arg1, %c0_i32, %c0_i32_0 : i32, i32, i32, i32
  }
  func.func @transform_1(%arg0: i32, %arg1: i32) -> (i32, i32, i32) {
    %c0_i32 = arith.constant 0 : i32
    %c0_i32_0 = arith.constant 0 : i32
    %c0_i32_1 = arith.constant 0 : i32
    return %arg0, %c0_i32, %c0_i32_0 : i32, i32, i32
  }
  func.func @transform_2(%arg0: i32, %arg1: i32) -> (i32, i32, i32) {
    %c0_i32 = arith.constant 0 : i32
    %c0_i32_0 = arith.constant 0 : i32
    %c0_i32_1 = arith.constant 0 : i32
    return %arg0, %c0_i32, %c0_i32_0 : i32, i32, i32
  }
  func.func @transform_3(%arg0: i32, %arg1: i32) -> i32 {
    %c0_i32 = arith.constant 0 : i32
    %c0_i32_0 = arith.constant 0 : i32
    return %c0_i32 : i32
  }
  func.func @transform_4(%arg0: i32, %arg1: i32) -> (i32, i32, i32, i32) {
    %c0_i32 = arith.constant 0 : i32
    %c0_i32_0 = arith.constant 0 : i32
    %c0_i32_1 = arith.constant 0 : i32
    return %arg0, %arg1, %c0_i32, %c0_i32_0 : i32, i32, i32, i32
  }
}

module attributes {stable_mosaic.version = 11 : i64} {
  func.func @_conv2_head_kernel(%arg0: i32, %arg1: memref<1x9x2x72xbf16, #tpu.memory_space<vmem>>, %arg2: memref<1x72x16xbf16, #tpu.memory_space<vmem>>, %arg3: memref<1x1x16xf32, #tpu.memory_space<vmem>>, %arg4: memref<3xf32, #tpu.memory_space<smem>>, %arg5: memref<1x9x16x64xf32, #tpu.memory_space<vmem>>, %arg6: memref<1x64xf32, #tpu.memory_space<vmem>>, %arg7: memref<2x64xf32, #tpu.memory_space<vmem>>) attributes {dimension_semantics = [#tpu.dimension_semantics<arbitrary>], iteration_bounds = array<i64: 3>, scalar_prefetch = 0 : i64, scratch_operands = 0 : i64, tpu.core_type = #tpu.core_type<tc>, window_params = [{transform_indices = @transform_0, window_bounds = array<i64: 1, 9, 2, 72>}, {transform_indices = @transform_1, window_bounds = array<i64: 1, 72, 16>}, {transform_indices = @transform_2, window_bounds = array<i64: 1, 1, 16>}, {transform_indices = @transform_3, window_bounds = array<i64: 3>}, {transform_indices = @transform_4, window_bounds = array<i64: 1, 9, 16, 64>}, {pipeline_mode = #tpu.pipeline_mode<synchronous>, transform_indices = @transform_5, window_bounds = array<i64: 1, 64>}, {pipeline_mode = #tpu.pipeline_mode<synchronous>, transform_indices = @transform_6, window_bounds = array<i64: 2, 64>}]} {
    %c0 = arith.constant 0 : index
    %c0_0 = arith.constant 0 : index
    %c0_1 = arith.constant 0 : index
    %0 = vector.load %arg2[%c0, %c0_0, %c0_1] : memref<1x72x16xbf16, #tpu.memory_space<vmem>>, vector<1x72x16xbf16>
    %1 = vector.shape_cast %0 : vector<1x72x16xbf16> to vector<72x16xbf16>
    %c0_2 = arith.constant 0 : index
    %c0_3 = arith.constant 0 : index
    %c0_4 = arith.constant 0 : index
    %2 = vector.load %arg3[%c0_2, %c0_3, %c0_4] : memref<1x1x16xf32, #tpu.memory_space<vmem>>, vector<1x1x16xf32>
    %3 = vector.shape_cast %2 : vector<1x1x16xf32> to vector<1x16xf32>
    %4 = arith.index_cast %arg0 : i32 to index
    %5 = memref.load %arg4[%4] : memref<3xf32, #tpu.memory_space<smem>>
    %cst = arith.constant 0.000000e+00 : f32
    %6 = vector.broadcast %cst : f32 to vector<2x64xf32>
    %c0_5 = arith.constant 0 : index
    %c0_6 = arith.constant 0 : index
    %c0_7 = arith.constant 0 : index
    %c0_8 = arith.constant 0 : index
    %7 = vector.load %arg1[%c0_5, %c0_6, %c0_7, %c0_8] : memref<1x9x2x72xbf16, #tpu.memory_space<vmem>>, vector<1x1x2x72xbf16>
    %8 = vector.shape_cast %7 : vector<1x1x2x72xbf16> to vector<2x72xbf16>
    %cst_9 = arith.constant dense<0.000000e+00> : vector<2x16xf32>
    %9 = tpu.matmul %8, %1, %cst_9 {dimension_numbers = #tpu.dot_dimension_numbers<[1], [0], [0], [1], [0, 0, 1, 1], [], []>} : vector<2x72xbf16>, vector<72x16xbf16>, vector<2x16xf32> -> vector<2x16xf32>
    %10 = vector.broadcast %3 : vector<1x16xf32> to vector<2x16xf32>
    %11 = arith.addf %9, %10 : vector<2x16xf32>
    %cst_10 = arith.constant 0.000000e+00 : f32
    %12 = vector.broadcast %cst_10 : f32 to vector<2x16xf32>
    %13 = arith.cmpf ogt, %11, %12 : vector<2x16xf32>
    %14 = vector.broadcast %5 : f32 to vector<2x16xf32>
    %15 = arith.mulf %14, %11 : vector<2x16xf32>
    %16 = arith.select %13, %11, %15 : vector<2x16xi1>, vector<2x16xf32>
    %c0_11 = arith.constant 0 : index
    %c0_12 = arith.constant 0 : index
    %c0_13 = arith.constant 0 : index
    %c0_14 = arith.constant 0 : index
    %17 = vector.load %arg5[%c0_11, %c0_12, %c0_13, %c0_14] : memref<1x9x16x64xf32, #tpu.memory_space<vmem>>, vector<1x1x16x64xf32>
    %18 = vector.shape_cast %17 : vector<1x1x16x64xf32> to vector<16x64xf32>
    %cst_15 = arith.constant dense<0.000000e+00> : vector<2x64xf32>
    %19 = tpu.matmul %16, %18, %cst_15 {dimension_numbers = #tpu.dot_dimension_numbers<[1], [0], [0], [1], [0, 0, 1, 1], [], []>} : vector<2x16xf32>, vector<16x64xf32>, vector<2x64xf32> -> vector<2x64xf32>
    %20 = arith.addf %6, %19 : vector<2x64xf32>
    %c0_16 = arith.constant 0 : index
    %c1 = arith.constant 1 : index
    %c0_17 = arith.constant 0 : index
    %c0_18 = arith.constant 0 : index
    %21 = vector.load %arg1[%c0_16, %c1, %c0_17, %c0_18] : memref<1x9x2x72xbf16, #tpu.memory_space<vmem>>, vector<1x1x2x72xbf16>
    %22 = vector.shape_cast %21 : vector<1x1x2x72xbf16> to vector<2x72xbf16>
    %cst_19 = arith.constant dense<0.000000e+00> : vector<2x16xf32>
    %23 = tpu.matmul %22, %1, %cst_19 {dimension_numbers = #tpu.dot_dimension_numbers<[1], [0], [0], [1], [0, 0, 1, 1], [], []>} : vector<2x72xbf16>, vector<72x16xbf16>, vector<2x16xf32> -> vector<2x16xf32>
    %24 = vector.broadcast %3 : vector<1x16xf32> to vector<2x16xf32>
    %25 = arith.addf %23, %24 : vector<2x16xf32>
    %cst_20 = arith.constant 0.000000e+00 : f32
    %26 = vector.broadcast %cst_20 : f32 to vector<2x16xf32>
    %27 = arith.cmpf ogt, %25, %26 : vector<2x16xf32>
    %28 = vector.broadcast %5 : f32 to vector<2x16xf32>
    %29 = arith.mulf %28, %25 : vector<2x16xf32>
    %30 = arith.select %27, %25, %29 : vector<2x16xi1>, vector<2x16xf32>
    %c0_21 = arith.constant 0 : index
    %c1_22 = arith.constant 1 : index
    %c0_23 = arith.constant 0 : index
    %c0_24 = arith.constant 0 : index
    %31 = vector.load %arg5[%c0_21, %c1_22, %c0_23, %c0_24] : memref<1x9x16x64xf32, #tpu.memory_space<vmem>>, vector<1x1x16x64xf32>
    %32 = vector.shape_cast %31 : vector<1x1x16x64xf32> to vector<16x64xf32>
    %cst_25 = arith.constant dense<0.000000e+00> : vector<2x64xf32>
    %33 = tpu.matmul %30, %32, %cst_25 {dimension_numbers = #tpu.dot_dimension_numbers<[1], [0], [0], [1], [0, 0, 1, 1], [], []>} : vector<2x16xf32>, vector<16x64xf32>, vector<2x64xf32> -> vector<2x64xf32>
    %34 = arith.addf %20, %33 : vector<2x64xf32>
    %c0_26 = arith.constant 0 : index
    %c2 = arith.constant 2 : index
    %c0_27 = arith.constant 0 : index
    %c0_28 = arith.constant 0 : index
    %35 = vector.load %arg1[%c0_26, %c2, %c0_27, %c0_28] : memref<1x9x2x72xbf16, #tpu.memory_space<vmem>>, vector<1x1x2x72xbf16>
    %36 = vector.shape_cast %35 : vector<1x1x2x72xbf16> to vector<2x72xbf16>
    %cst_29 = arith.constant dense<0.000000e+00> : vector<2x16xf32>
    %37 = tpu.matmul %36, %1, %cst_29 {dimension_numbers = #tpu.dot_dimension_numbers<[1], [0], [0], [1], [0, 0, 1, 1], [], []>} : vector<2x72xbf16>, vector<72x16xbf16>, vector<2x16xf32> -> vector<2x16xf32>
    %38 = vector.broadcast %3 : vector<1x16xf32> to vector<2x16xf32>
    %39 = arith.addf %37, %38 : vector<2x16xf32>
    %cst_30 = arith.constant 0.000000e+00 : f32
    %40 = vector.broadcast %cst_30 : f32 to vector<2x16xf32>
    %41 = arith.cmpf ogt, %39, %40 : vector<2x16xf32>
    %42 = vector.broadcast %5 : f32 to vector<2x16xf32>
    %43 = arith.mulf %42, %39 : vector<2x16xf32>
    %44 = arith.select %41, %39, %43 : vector<2x16xi1>, vector<2x16xf32>
    %c0_31 = arith.constant 0 : index
    %c2_32 = arith.constant 2 : index
    %c0_33 = arith.constant 0 : index
    %c0_34 = arith.constant 0 : index
    %45 = vector.load %arg5[%c0_31, %c2_32, %c0_33, %c0_34] : memref<1x9x16x64xf32, #tpu.memory_space<vmem>>, vector<1x1x16x64xf32>
    %46 = vector.shape_cast %45 : vector<1x1x16x64xf32> to vector<16x64xf32>
    %cst_35 = arith.constant dense<0.000000e+00> : vector<2x64xf32>
    %47 = tpu.matmul %44, %46, %cst_35 {dimension_numbers = #tpu.dot_dimension_numbers<[1], [0], [0], [1], [0, 0, 1, 1], [], []>} : vector<2x16xf32>, vector<16x64xf32>, vector<2x64xf32> -> vector<2x64xf32>
    %48 = arith.addf %34, %47 : vector<2x64xf32>
    %c0_36 = arith.constant 0 : index
    %c3 = arith.constant 3 : index
    %c0_37 = arith.constant 0 : index
    %c0_38 = arith.constant 0 : index
    %49 = vector.load %arg1[%c0_36, %c3, %c0_37, %c0_38] : memref<1x9x2x72xbf16, #tpu.memory_space<vmem>>, vector<1x1x2x72xbf16>
    %50 = vector.shape_cast %49 : vector<1x1x2x72xbf16> to vector<2x72xbf16>
    %cst_39 = arith.constant dense<0.000000e+00> : vector<2x16xf32>
    %51 = tpu.matmul %50, %1, %cst_39 {dimension_numbers = #tpu.dot_dimension_numbers<[1], [0], [0], [1], [0, 0, 1, 1], [], []>} : vector<2x72xbf16>, vector<72x16xbf16>, vector<2x16xf32> -> vector<2x16xf32>
    %52 = vector.broadcast %3 : vector<1x16xf32> to vector<2x16xf32>
    %53 = arith.addf %51, %52 : vector<2x16xf32>
    %cst_40 = arith.constant 0.000000e+00 : f32
    %54 = vector.broadcast %cst_40 : f32 to vector<2x16xf32>
    %55 = arith.cmpf ogt, %53, %54 : vector<2x16xf32>
    %56 = vector.broadcast %5 : f32 to vector<2x16xf32>
    %57 = arith.mulf %56, %53 : vector<2x16xf32>
    %58 = arith.select %55, %53, %57 : vector<2x16xi1>, vector<2x16xf32>
    %c0_41 = arith.constant 0 : index
    %c3_42 = arith.constant 3 : index
    %c0_43 = arith.constant 0 : index
    %c0_44 = arith.constant 0 : index
    %59 = vector.load %arg5[%c0_41, %c3_42, %c0_43, %c0_44] : memref<1x9x16x64xf32, #tpu.memory_space<vmem>>, vector<1x1x16x64xf32>
    %60 = vector.shape_cast %59 : vector<1x1x16x64xf32> to vector<16x64xf32>
    %cst_45 = arith.constant dense<0.000000e+00> : vector<2x64xf32>
    %61 = tpu.matmul %58, %60, %cst_45 {dimension_numbers = #tpu.dot_dimension_numbers<[1], [0], [0], [1], [0, 0, 1, 1], [], []>} : vector<2x16xf32>, vector<16x64xf32>, vector<2x64xf32> -> vector<2x64xf32>
    %62 = arith.addf %48, %61 : vector<2x64xf32>
    %c0_46 = arith.constant 0 : index
    %c4 = arith.constant 4 : index
    %c0_47 = arith.constant 0 : index
    %c0_48 = arith.constant 0 : index
    %63 = vector.load %arg1[%c0_46, %c4, %c0_47, %c0_48] : memref<1x9x2x72xbf16, #tpu.memory_space<vmem>>, vector<1x1x2x72xbf16>
    %64 = vector.shape_cast %63 : vector<1x1x2x72xbf16> to vector<2x72xbf16>
    %cst_49 = arith.constant dense<0.000000e+00> : vector<2x16xf32>
    %65 = tpu.matmul %64, %1, %cst_49 {dimension_numbers = #tpu.dot_dimension_numbers<[1], [0], [0], [1], [0, 0, 1, 1], [], []>} : vector<2x72xbf16>, vector<72x16xbf16>, vector<2x16xf32> -> vector<2x16xf32>
    %66 = vector.broadcast %3 : vector<1x16xf32> to vector<2x16xf32>
    %67 = arith.addf %65, %66 : vector<2x16xf32>
    %cst_50 = arith.constant 0.000000e+00 : f32
    %68 = vector.broadcast %cst_50 : f32 to vector<2x16xf32>
    %69 = arith.cmpf ogt, %67, %68 : vector<2x16xf32>
    %70 = vector.broadcast %5 : f32 to vector<2x16xf32>
    %71 = arith.mulf %70, %67 : vector<2x16xf32>
    %72 = arith.select %69, %67, %71 : vector<2x16xi1>, vector<2x16xf32>
    %c0_51 = arith.constant 0 : index
    %c4_52 = arith.constant 4 : index
    %c0_53 = arith.constant 0 : index
    %c0_54 = arith.constant 0 : index
    %73 = vector.load %arg5[%c0_51, %c4_52, %c0_53, %c0_54] : memref<1x9x16x64xf32, #tpu.memory_space<vmem>>, vector<1x1x16x64xf32>
    %74 = vector.shape_cast %73 : vector<1x1x16x64xf32> to vector<16x64xf32>
    %cst_55 = arith.constant dense<0.000000e+00> : vector<2x64xf32>
    %75 = tpu.matmul %72, %74, %cst_55 {dimension_numbers = #tpu.dot_dimension_numbers<[1], [0], [0], [1], [0, 0, 1, 1], [], []>} : vector<2x16xf32>, vector<16x64xf32>, vector<2x64xf32> -> vector<2x64xf32>
    %76 = arith.addf %62, %75 : vector<2x64xf32>
    %c0_56 = arith.constant 0 : index
    %c5 = arith.constant 5 : index
    %c0_57 = arith.constant 0 : index
    %c0_58 = arith.constant 0 : index
    %77 = vector.load %arg1[%c0_56, %c5, %c0_57, %c0_58] : memref<1x9x2x72xbf16, #tpu.memory_space<vmem>>, vector<1x1x2x72xbf16>
    %78 = vector.shape_cast %77 : vector<1x1x2x72xbf16> to vector<2x72xbf16>
    %cst_59 = arith.constant dense<0.000000e+00> : vector<2x16xf32>
    %79 = tpu.matmul %78, %1, %cst_59 {dimension_numbers = #tpu.dot_dimension_numbers<[1], [0], [0], [1], [0, 0, 1, 1], [], []>} : vector<2x72xbf16>, vector<72x16xbf16>, vector<2x16xf32> -> vector<2x16xf32>
    %80 = vector.broadcast %3 : vector<1x16xf32> to vector<2x16xf32>
    %81 = arith.addf %79, %80 : vector<2x16xf32>
    %cst_60 = arith.constant 0.000000e+00 : f32
    %82 = vector.broadcast %cst_60 : f32 to vector<2x16xf32>
    %83 = arith.cmpf ogt, %81, %82 : vector<2x16xf32>
    %84 = vector.broadcast %5 : f32 to vector<2x16xf32>
    %85 = arith.mulf %84, %81 : vector<2x16xf32>
    %86 = arith.select %83, %81, %85 : vector<2x16xi1>, vector<2x16xf32>
    %c0_61 = arith.constant 0 : index
    %c5_62 = arith.constant 5 : index
    %c0_63 = arith.constant 0 : index
    %c0_64 = arith.constant 0 : index
    %87 = vector.load %arg5[%c0_61, %c5_62, %c0_63, %c0_64] : memref<1x9x16x64xf32, #tpu.memory_space<vmem>>, vector<1x1x16x64xf32>
    %88 = vector.shape_cast %87 : vector<1x1x16x64xf32> to vector<16x64xf32>
    %cst_65 = arith.constant dense<0.000000e+00> : vector<2x64xf32>
    %89 = tpu.matmul %86, %88, %cst_65 {dimension_numbers = #tpu.dot_dimension_numbers<[1], [0], [0], [1], [0, 0, 1, 1], [], []>} : vector<2x16xf32>, vector<16x64xf32>, vector<2x64xf32> -> vector<2x64xf32>
    %90 = arith.addf %76, %89 : vector<2x64xf32>
    %c0_66 = arith.constant 0 : index
    %c6 = arith.constant 6 : index
    %c0_67 = arith.constant 0 : index
    %c0_68 = arith.constant 0 : index
    %91 = vector.load %arg1[%c0_66, %c6, %c0_67, %c0_68] : memref<1x9x2x72xbf16, #tpu.memory_space<vmem>>, vector<1x1x2x72xbf16>
    %92 = vector.shape_cast %91 : vector<1x1x2x72xbf16> to vector<2x72xbf16>
    %cst_69 = arith.constant dense<0.000000e+00> : vector<2x16xf32>
    %93 = tpu.matmul %92, %1, %cst_69 {dimension_numbers = #tpu.dot_dimension_numbers<[1], [0], [0], [1], [0, 0, 1, 1], [], []>} : vector<2x72xbf16>, vector<72x16xbf16>, vector<2x16xf32> -> vector<2x16xf32>
    %94 = vector.broadcast %3 : vector<1x16xf32> to vector<2x16xf32>
    %95 = arith.addf %93, %94 : vector<2x16xf32>
    %cst_70 = arith.constant 0.000000e+00 : f32
    %96 = vector.broadcast %cst_70 : f32 to vector<2x16xf32>
    %97 = arith.cmpf ogt, %95, %96 : vector<2x16xf32>
    %98 = vector.broadcast %5 : f32 to vector<2x16xf32>
    %99 = arith.mulf %98, %95 : vector<2x16xf32>
    %100 = arith.select %97, %95, %99 : vector<2x16xi1>, vector<2x16xf32>
    %c0_71 = arith.constant 0 : index
    %c6_72 = arith.constant 6 : index
    %c0_73 = arith.constant 0 : index
    %c0_74 = arith.constant 0 : index
    %101 = vector.load %arg5[%c0_71, %c6_72, %c0_73, %c0_74] : memref<1x9x16x64xf32, #tpu.memory_space<vmem>>, vector<1x1x16x64xf32>
    %102 = vector.shape_cast %101 : vector<1x1x16x64xf32> to vector<16x64xf32>
    %cst_75 = arith.constant dense<0.000000e+00> : vector<2x64xf32>
    %103 = tpu.matmul %100, %102, %cst_75 {dimension_numbers = #tpu.dot_dimension_numbers<[1], [0], [0], [1], [0, 0, 1, 1], [], []>} : vector<2x16xf32>, vector<16x64xf32>, vector<2x64xf32> -> vector<2x64xf32>
    %104 = arith.addf %90, %103 : vector<2x64xf32>
    %c0_76 = arith.constant 0 : index
    %c7 = arith.constant 7 : index
    %c0_77 = arith.constant 0 : index
    %c0_78 = arith.constant 0 : index
    %105 = vector.load %arg1[%c0_76, %c7, %c0_77, %c0_78] : memref<1x9x2x72xbf16, #tpu.memory_space<vmem>>, vector<1x1x2x72xbf16>
    %106 = vector.shape_cast %105 : vector<1x1x2x72xbf16> to vector<2x72xbf16>
    %cst_79 = arith.constant dense<0.000000e+00> : vector<2x16xf32>
    %107 = tpu.matmul %106, %1, %cst_79 {dimension_numbers = #tpu.dot_dimension_numbers<[1], [0], [0], [1], [0, 0, 1, 1], [], []>} : vector<2x72xbf16>, vector<72x16xbf16>, vector<2x16xf32> -> vector<2x16xf32>
    %108 = vector.broadcast %3 : vector<1x16xf32> to vector<2x16xf32>
    %109 = arith.addf %107, %108 : vector<2x16xf32>
    %cst_80 = arith.constant 0.000000e+00 : f32
    %110 = vector.broadcast %cst_80 : f32 to vector<2x16xf32>
    %111 = arith.cmpf ogt, %109, %110 : vector<2x16xf32>
    %112 = vector.broadcast %5 : f32 to vector<2x16xf32>
    %113 = arith.mulf %112, %109 : vector<2x16xf32>
    %114 = arith.select %111, %109, %113 : vector<2x16xi1>, vector<2x16xf32>
    %c0_81 = arith.constant 0 : index
    %c7_82 = arith.constant 7 : index
    %c0_83 = arith.constant 0 : index
    %c0_84 = arith.constant 0 : index
    %115 = vector.load %arg5[%c0_81, %c7_82, %c0_83, %c0_84] : memref<1x9x16x64xf32, #tpu.memory_space<vmem>>, vector<1x1x16x64xf32>
    %116 = vector.shape_cast %115 : vector<1x1x16x64xf32> to vector<16x64xf32>
    %cst_85 = arith.constant dense<0.000000e+00> : vector<2x64xf32>
    %117 = tpu.matmul %114, %116, %cst_85 {dimension_numbers = #tpu.dot_dimension_numbers<[1], [0], [0], [1], [0, 0, 1, 1], [], []>} : vector<2x16xf32>, vector<16x64xf32>, vector<2x64xf32> -> vector<2x64xf32>
    %118 = arith.addf %104, %117 : vector<2x64xf32>
    %c0_86 = arith.constant 0 : index
    %c8 = arith.constant 8 : index
    %c0_87 = arith.constant 0 : index
    %c0_88 = arith.constant 0 : index
    %119 = vector.load %arg1[%c0_86, %c8, %c0_87, %c0_88] : memref<1x9x2x72xbf16, #tpu.memory_space<vmem>>, vector<1x1x2x72xbf16>
    %120 = vector.shape_cast %119 : vector<1x1x2x72xbf16> to vector<2x72xbf16>
    %cst_89 = arith.constant dense<0.000000e+00> : vector<2x16xf32>
    %121 = tpu.matmul %120, %1, %cst_89 {dimension_numbers = #tpu.dot_dimension_numbers<[1], [0], [0], [1], [0, 0, 1, 1], [], []>} : vector<2x72xbf16>, vector<72x16xbf16>, vector<2x16xf32> -> vector<2x16xf32>
    %122 = vector.broadcast %3 : vector<1x16xf32> to vector<2x16xf32>
    %123 = arith.addf %121, %122 : vector<2x16xf32>
    %cst_90 = arith.constant 0.000000e+00 : f32
    %124 = vector.broadcast %cst_90 : f32 to vector<2x16xf32>
    %125 = arith.cmpf ogt, %123, %124 : vector<2x16xf32>
    %126 = vector.broadcast %5 : f32 to vector<2x16xf32>
    %127 = arith.mulf %126, %123 : vector<2x16xf32>
    %128 = arith.select %125, %123, %127 : vector<2x16xi1>, vector<2x16xf32>
    %c0_91 = arith.constant 0 : index
    %c8_92 = arith.constant 8 : index
    %c0_93 = arith.constant 0 : index
    %c0_94 = arith.constant 0 : index
    %129 = vector.load %arg5[%c0_91, %c8_92, %c0_93, %c0_94] : memref<1x9x16x64xf32, #tpu.memory_space<vmem>>, vector<1x1x16x64xf32>
    %130 = vector.shape_cast %129 : vector<1x1x16x64xf32> to vector<16x64xf32>
    %cst_95 = arith.constant dense<0.000000e+00> : vector<2x64xf32>
    %131 = tpu.matmul %128, %130, %cst_95 {dimension_numbers = #tpu.dot_dimension_numbers<[1], [0], [0], [1], [0, 0, 1, 1], [], []>} : vector<2x16xf32>, vector<16x64xf32>, vector<2x64xf32> -> vector<2x64xf32>
    %132 = arith.addf %118, %131 : vector<2x64xf32>
    %c0_i32 = arith.constant 0 : i32
    %133 = arith.cmpi eq, %arg0, %c0_i32 : i32
    %134 = arith.extui %133 : i1 to i32
    %c0_i32_96 = arith.constant 0 : i32
    %135 = arith.cmpi ne, %134, %c0_i32_96 : i32
    scf.if %135 {
      %c0_99 = arith.constant 0 : index
      %c0_100 = arith.constant 0 : index
      %139 = vector.load %arg6[%c0_99, %c0_100] : memref<1x64xf32, #tpu.memory_space<vmem>>, vector<1x64xf32>
      %140 = vector.broadcast %139 : vector<1x64xf32> to vector<2x64xf32>
      %141 = arith.addf %132, %140 : vector<2x64xf32>
      %c0_101 = arith.constant 0 : index
      %c0_102 = arith.constant 0 : index
      %142 = vector.load %arg7[%c0_101, %c0_102] : memref<2x64xf32, #tpu.memory_space<vmem>>, vector<2x64xf32>
      tpu.vector_store %arg7[%c0_101, %c0_102], %141 {strides = array<i32>} : memref<2x64xf32, #tpu.memory_space<vmem>>, vector<2x64xf32>,
    } else {
    }
    %c0_i32_97 = arith.constant 0 : i32
    %136 = arith.cmpi sgt, %arg0, %c0_i32_97 : i32
    %137 = arith.extui %136 : i1 to i32
    %c0_i32_98 = arith.constant 0 : i32
    %138 = arith.cmpi ne, %137, %c0_i32_98 : i32
    scf.if %138 {
      %c0_99 = arith.constant 0 : index
      %c0_100 = arith.constant 0 : index
      %139 = vector.load %arg7[%c0_99, %c0_100] : memref<2x64xf32, #tpu.memory_space<vmem>>, vector<2x64xf32>
      %140 = arith.addf %139, %132 : vector<2x64xf32>
      %c0_101 = arith.constant 0 : index
      %c0_102 = arith.constant 0 : index
      %141 = vector.load %arg7[%c0_101, %c0_102] : memref<2x64xf32, #tpu.memory_space<vmem>>, vector<2x64xf32>
      tpu.vector_store %arg7[%c0_101, %c0_102], %140 {strides = array<i32>} : memref<2x64xf32, #tpu.memory_space<vmem>>, vector<2x64xf32>,
    } else {
    }
    return
  }
  func.func @transform_0(%arg0: i32) -> (i32, i32, i32, i32) {
    %c0_i32 = arith.constant 0 : i32
    %c0_i32_0 = arith.constant 0 : i32
    %c0_i32_1 = arith.constant 0 : i32
    %c0_i32_2 = arith.constant 0 : i32
    return %arg0, %c0_i32, %c0_i32_0, %c0_i32_1 : i32, i32, i32, i32
  }
  func.func @transform_1(%arg0: i32) -> (i32, i32, i32) {
    %c0_i32 = arith.constant 0 : i32
    %c0_i32_0 = arith.constant 0 : i32
    %c0_i32_1 = arith.constant 0 : i32
    return %arg0, %c0_i32, %c0_i32_0 : i32, i32, i32
  }
  func.func @transform_2(%arg0: i32) -> (i32, i32, i32) {
    %c0_i32 = arith.constant 0 : i32
    %c0_i32_0 = arith.constant 0 : i32
    %c0_i32_1 = arith.constant 0 : i32
    return %arg0, %c0_i32, %c0_i32_0 : i32, i32, i32
  }
  func.func @transform_3(%arg0: i32) -> i32 {
    %c0_i32 = arith.constant 0 : i32
    %c0_i32_0 = arith.constant 0 : i32
    return %c0_i32 : i32
  }
  func.func @transform_4(%arg0: i32) -> (i32, i32, i32, i32) {
    %c0_i32 = arith.constant 0 : i32
    %c0_i32_0 = arith.constant 0 : i32
    %c0_i32_1 = arith.constant 0 : i32
    %c0_i32_2 = arith.constant 0 : i32
    return %arg0, %c0_i32, %c0_i32_0, %c0_i32_1 : i32, i32, i32, i32
  }
  func.func @transform_5(%arg0: i32) -> (i32, i32) {
    %c0_i32 = arith.constant 0 : i32
    %c0_i32_0 = arith.constant 0 : i32
    %c0_i32_1 = arith.constant 0 : i32
    return %c0_i32, %c0_i32_0 : i32, i32
  }
  func.func @transform_6(%arg0: i32) -> (i32, i32) {
    %c0_i32 = arith.constant 0 : i32
    %c0_i32_0 = arith.constant 0 : i32
    %c0_i32_1 = arith.constant 0 : i32
    return %c0_i32, %c0_i32_0 : i32, i32
  }
}

</mosaic_0001>

<bundles_post_ra>
// kernel: encoder_forward.2
= control target key start
LH: loop header
LB: loop body
LE: loop exit
PB: predicated region body
PF: predicated region fallthrough
CT: control target
= control target key end

     0   :  { %9 = vsyncpa [#allocation3], 0  ;;  %s3458_s15 = smov 0   ;;  %s3460_s16 = smov 0   ;;  %s3887_s0 = inlined_call_operand.vmem [shape: bf16[3,1,1152,512], index: 0, kind: input, shape index: {}]   ;;  %s3888_s1 = inlined_call_operand.vmem [shape: bf16[3,8,1152], index: 1, kind: input, shape index: {}]   ;;  %s3889_s2 = inlined_call_operand.vmem [shape: f32[3,8,1], index: 2, kind: input, shape index: {}]   ;;  %s3890_s3 = inlined_call_operand.vmem [shape: f32[3], index: 3, kind: input, shape index: {}]   ;;  %s3891_s4 = inlined_call_operand.vmem [shape: f32[3,1,8,128], index: 4, kind: output, shape index: {}]  }
   0x1   :  { %s3462_s17 = smov 0  }
   0x2 LB: > { %s2598_s18 = sadd.s32 4294967295, %s3429_s17   ;;  %s27_s19 = sadd.s32 1, %s3425_s16  ;;  %s3429_s17 = sphi %s3462_s17, %s15_s17   ;;  %s3425_s16 = sphi %s3460_s16, %s3895_s16   ;;  %s3421_s15 = sphi %s3458_s15, %s3894_s15  }
   0x3   : > { %p29_p0 = scmp.ge.s32.totalorder %s27_s19, 3  ;;  %p2600_p1 = scmp.ge.s32.totalorder %s3429_s17, 1 }
   0x4   : > { %p161_p2 = scmp.lt.s32.totalorder %s3429_s17, 4  ;;  %p3483_p4 = scmp.eq.s32.totalorder %s2598_s18, 0 }
   0x5   : > { %s3897_s19 = smov (%p29_p0, %s27_s19), 0  ;;  %s174_s24 = sshll.u32 %s3890_s3, 4  ;;  %s175_s24 = int_to_ptr.vmem [resolvable:$true] %s174_s24 }
   0x6   : > { %p3479_p3 = pnand %p2600_p1, %p161_p2  ;;  %s3388_s25 = scalar_lea.vmem %s175_s24, 16 }
   0x7   : > { %p3389_p7 = scmp.ne.s32.totalorder %s175_s24, %s3388_s25  ;;  %p3396_p11 = scmp.lt.s32.totalorder %s175_s24, %s175_s24 }
   0x8   : > { %p2914_p5 = pneg %p3479_p3  ;;  %p3397_p12 = scmp.lt.s32.totalorder %s3388_s25, %s3388_s25 }
   0xa   : > { %p2915_p6 = pnand %p3483_p4, %p2914_p5  ;;  %p3398_p13 = por %p3397_p12, %p3396_p11 }
   0xc   : > { %p3390_p8 = pneg %p2915_p6 }
   0xe   : > { %p3391_p9 = pnand %p3390_p8, %p3389_p7 }
  0x10   : > { %p3392_p10 = pneg %p3391_p9 }
  0x12   : > { %p3399_p0 = pnand %p3398_p13, %p3392_p10 }
  0x14   : > { %3402 = shalt.err (!%p3399_p0)
}
  0x15   : > { %s3431_s26 = smov [#allocation2]   ;;  %214 = sbr.rel (%p3479_p3) target bundleno = 530 (0x212), region = 36 }
  0x16   : > { %2917 = dma.vmem_to_smem (!%p2915_p6), %s175_s24, 16, %s3431_s26, [#allocation3]  }
  0x1a   : > { %3416 = dma.done.wait (%p3483_p4), [#allocation3], 16  }
  0x1b   : > { %3418 = vsyncadd (%p3483_p4), [#allocation3], 4294967280 }
  0x1c   : > { %220 = sfence }
  0x1d   : > { %p256_p1 = scmp.lt.s32.totalorder %s3421_s15, 2  ;;  %v3432_v9 = vmov 0   ;;  %s2463_s14 = sld [smem:[#allocation2 + %s3421_s15]] }
  0x1e   : > { %2946 = vset.pattern.permute.xlu0 %v3432_v9 }
  0x1f   : > { %s3502_s27 = scalar_select %p256_p1, %s3421_s15, 2 }
  0x21   : > { %s2908_s28 = smul.u32 2304, %s3502_s27  ;;  %s2607_s10 = sshll.u32 %s3502_s27, 3 }
  0x22   : > { %s2909_s6 = smul.u32 36, %s3502_s27  ;;  %s273_s13 = scalar_lea.vmem %s3889_s2, %s2607_s10 }
  0x23   : > { %s3508_s5 = scalar_lea.vmem %s3887_s0, %s2908_s28  ;;  %s280_s20 = scalar_lea.vmem %s3891_s4, %s2607_s10 }
  0x24   : > { %v2947_v0 = vld [vmem:[%s3508_s5 + $0xe4] ss:$16 sps:$4 sm:$0xff]   ;;  %v2951_v2 = vld [vmem:[%s3508_s5 + $0xe0] ss:$16 sps:$4 sm:$0xff]   ;;  %s3559_s9 = scalar_lea.vmem %s3888_s1, %s2909_s6 }
  0x25   : > { %v2949_v1 = vld [vmem:[%s3508_s5 + $0x2e4] ss:$16 sps:$4 sm:$0xff]   ;;  %2053 = vmatprep.subr.bf16.mxu0 %v2947_v0  ;;  %v2952_v3 = vld [vmem:[%s3508_s5 + $0x2e0] ss:$16 sps:$4 sm:$0xff]   ;;  %v283_v49 = vld [vmem:[%s3559_s9 + $0x8] sm:$0xff] }
  0x26   : > { %2094 = vmatprep.subr.bf16.mxu1 %v2949_v1  ;;  %v2953_v4 = vld [vmem:[%s3508_s5 + $0xc4] ss:$16 sps:$4 sm:$0xff]   ;;  %2054 = vmatpush1.bf16.msra.mxu0 %v2951_v2  ;;  %v2957_v6 = vld [vmem:[%s3508_s5 + $0xc0] ss:$16 sps:$4 sm:$0xff]   ;;  %v3569_v52 = vcombine.high %v283_v49, %v283_v49 }
  0x27   : > { %2095 = vmatpush1.bf16.msra.mxu1 %v2952_v3  ;;  %v2955_v5 = vld [vmem:[%s3508_s5 + $0x2c4] ss:$16 sps:$4 sm:$0xff]   ;;  %2055 = vmatprep.subr.bf16.mxu0 %v2953_v4  ;;  %v2958_v7 = vld [vmem:[%s3508_s5 + $0x2c0] ss:$16 sps:$4 sm:$0xff]  }
  0x28   : > { %2096 = vmatprep.subr.bf16.mxu1 %v2955_v5  ;;  %v2959_v8 = vld [vmem:[%s3508_s5 + $0xa4] ss:$16 sps:$4 sm:$0xff]   ;;  %v2963_v11 = vld [vmem:[%s3508_s5 + $0xa0] ss:$16 sps:$4 sm:$0xff]   ;;  %2126 = vmatprep.mubr.bf16.mxu1 %v3569_v52 }
  0x29   : > { %v2961_v10 = vld [vmem:[%s3508_s5 + $0x2a4] ss:$16 sps:$4 sm:$0xff]   ;;  %v2964_v12 = vld [vmem:[%s3508_s5 + $0x2a0] ss:$16 sps:$4 sm:$0xff]  }
  0x2a   : > { %2056 = vmatpush1.bf16.msra.mxu0 %v2957_v6  ;;  %v2965_v13 = vld [vmem:[%s3508_s5 + $0x84] ss:$16 sps:$4 sm:$0xff]   ;;  %v2969_v15 = vld [vmem:[%s3508_s5 + $0x80] ss:$16 sps:$4 sm:$0xff]  }
  0x2b   : > { %2097 = vmatpush1.bf16.msra.mxu1 %v2958_v7  ;;  %2057 = vmatprep.subr.bf16.mxu0 %v2959_v8  ;;  %v2967_v14 = vld [vmem:[%s3508_s5 + $0x284] ss:$16 sps:$4 sm:$0xff]   ;;  %v2970_v16 = vld [vmem:[%s3508_s5 + $0x280] ss:$16 sps:$4 sm:$0xff]   ;;  %v3593_v8 = vcombine.low %v283_v49, %v283_v49 }
  0x2c   : > { %2098 = vmatprep.subr.bf16.mxu1 %v2961_v10  ;;  %v2971_v17 = vld [vmem:[%s3508_s5 + $0x64] ss:$16 sps:$4 sm:$0xff]   ;;  %v2975_v19 = vld [vmem:[%s3508_s5 + $0x60] ss:$16 sps:$4 sm:$0xff]  }
  0x2d   : > { %v2973_v18 = vld [vmem:[%s3508_s5 + $0x264] ss:$16 sps:$4 sm:$0xff]   ;;  %v2976_v20 = vld [vmem:[%s3508_s5 + $0x260] ss:$16 sps:$4 sm:$0xff]  }
  0x2e   : > { %2058 = vmatpush1.bf16.msra.mxu0 %v2963_v11  ;;  %v2977_v21 = vld [vmem:[%s3508_s5 + $0x44] ss:$16 sps:$4 sm:$0xff]   ;;  %v2981_v23 = vld [vmem:[%s3508_s5 + $0x40] ss:$16 sps:$4 sm:$0xff]  }
  0x2f   : > { %2099 = vmatpush1.bf16.msra.mxu1 %v2964_v12  ;;  %2059 = vmatprep.subr.bf16.mxu0 %v2965_v13  ;;  %v2979_v22 = vld [vmem:[%s3508_s5 + $0x244] ss:$16 sps:$4 sm:$0xff]   ;;  %v2982_v24 = vld [vmem:[%s3508_s5 + $0x240] ss:$16 sps:$4 sm:$0xff]  }
  0x30   : > { %2100 = vmatprep.subr.bf16.mxu1 %v2967_v14  ;;  %v2983_v25 = vld [vmem:[%s3508_s5 + $0x24] ss:$16 sps:$4 sm:$0xff]   ;;  %v2987_v27 = vld [vmem:[%s3508_s5 + $0x20] ss:$16 sps:$4 sm:$0xff]  }
  0x31   : > { %v2985_v26 = vld [vmem:[%s3508_s5 + $0x224] ss:$16 sps:$4 sm:$0xff]   ;;  %v2988_v28 = vld [vmem:[%s3508_s5 + $0x220] ss:$16 sps:$4 sm:$0xff]  }
  0x32   : > { %2060 = vmatpush1.bf16.msra.mxu0 %v2969_v15  ;;  %v2989_v29 = vld [vmem:[%s3508_s5 + $0x4] ss:$16 sps:$4 sm:$0xff]   ;;  %v2993_v31 = vld [vmem:[%s3508_s5] ss:$16 sps:$4 sm:$0xff]  }
  0x33   : > { %2101 = vmatpush1.bf16.msra.mxu1 %v2970_v16  ;;  %2061 = vmatprep.subr.bf16.mxu0 %v2971_v17  ;;  %v2991_v30 = vld [vmem:[%s3508_s5 + $0x204] ss:$16 sps:$4 sm:$0xff]   ;;  %v2994_v32 = vld [vmem:[%s3508_s5 + $0x200] ss:$16 sps:$4 sm:$0xff]  }
  0x34   : > { %2102 = vmatprep.subr.bf16.mxu1 %v2973_v18  ;;  %v2995_v33 = vld [vmem:[%s3508_s5 + $0x1e4] ss:$16 sps:$4 sm:$0xff]   ;;  %v2999_v35 = vld [vmem:[%s3508_s5 + $0x1e0] ss:$16 sps:$4 sm:$0xff]  }
  0x35   : > { %v2997_v34 = vld [vmem:[%s3508_s5 + $0x3e4] ss:$16 sps:$4 sm:$0xff]   ;;  %v3000_v36 = vld [vmem:[%s3508_s5 + $0x3e0] ss:$16 sps:$4 sm:$0xff]  }
  0x36   : > { %2062 = vmatpush1.bf16.msra.mxu0 %v2975_v19  ;;  %v3001_v37 = vld [vmem:[%s3508_s5 + $0x1c4] ss:$16 sps:$4 sm:$0xff]   ;;  %v3005_v39 = vld [vmem:[%s3508_s5 + $0x1c0] ss:$16 sps:$4 sm:$0xff]  }
  0x37   : > { %2103 = vmatpush1.bf16.msra.mxu1 %v2976_v20  ;;  %2063 = vmatprep.subr.bf16.mxu0 %v2977_v21  ;;  %v3003_v38 = vld [vmem:[%s3508_s5 + $0x3c4] ss:$16 sps:$4 sm:$0xff]   ;;  %v3006_v40 = vld [vmem:[%s3508_s5 + $0x3c0] ss:$16 sps:$4 sm:$0xff]  }
  0x38   : > { %2104 = vmatprep.subr.bf16.mxu1 %v2979_v22  ;;  %v3007_v41 = vld [vmem:[%s3508_s5 + $0x1a4] ss:$16 sps:$4 sm:$0xff]   ;;  %v3011_v43 = vld [vmem:[%s3508_s5 + $0x1a0] ss:$16 sps:$4 sm:$0xff]  }
  0x39   : > { %v3009_v42 = vld [vmem:[%s3508_s5 + $0x3a4] ss:$16 sps:$4 sm:$0xff]   ;;  %v3012_v44 = vld [vmem:[%s3508_s5 + $0x3a0] ss:$16 sps:$4 sm:$0xff]  }
  0x3a   : > { %2064 = vmatpush1.bf16.msra.mxu0 %v2981_v23  ;;  %v3013_v45 = vld [vmem:[%s3508_s5 + $0x184] ss:$16 sps:$4 sm:$0xff]   ;;  %v3017_v50 = vld [vmem:[%s3508_s5 + $0x180] ss:$16 sps:$4 sm:$0xff]  }
  0x3b   : > { %2105 = vmatpush1.bf16.msra.mxu1 %v2982_v24  ;;  %2065 = vmatprep.subr.bf16.mxu0 %v2983_v25  ;;  %v3015_v46 = vld [vmem:[%s3508_s5 + $0x384] ss:$16 sps:$4 sm:$0xff]   ;;  %v3018_v51 = vld [vmem:[%s3508_s5 + $0x380] ss:$16 sps:$4 sm:$0xff]  }
  0x3c   : > { %2106 = vmatprep.subr.bf16.mxu1 %v2985_v26  ;;  %v282_v47 = vld [vmem:[%s3559_s9] sm:$0xff] }
  0x3d   : > { %v3564_v48 = vcombine.high %v282_v47, %v282_v47  ;;  %v3019_v53 = vld [vmem:[%s3508_s5 + $0x164] ss:$16 sps:$4 sm:$0xff]   ;;  %v3023_v55 = vld [vmem:[%s3508_s5 + $0x160] ss:$16 sps:$4 sm:$0xff]   ;;  %v3591_v7 = vcombine.low %v282_v47, %v282_v47 }
  0x3e   : > { %2066 = vmatpush1.bf16.msra.mxu0 %v2987_v27  ;;  %v3021_v54 = vld [vmem:[%s3508_s5 + $0x364] ss:$16 sps:$4 sm:$0xff]   ;;  %v3024_v56 = vld [vmem:[%s3508_s5 + $0x360] ss:$16 sps:$4 sm:$0xff]  }
  0x3f   : > { %2107 = vmatpush1.bf16.msra.mxu1 %v2988_v28  ;;  %2067 = vmatprep.subr.bf16.mxu0 %v2989_v29  ;;  %v3025_v57 = vld [vmem:[%s3508_s5 + $0x144] ss:$16 sps:$4 sm:$0xff]   ;;  %v3029_v59 = vld [vmem:[%s3508_s5 + $0x140] ss:$16 sps:$4 sm:$0xff]  }
  0x40   : > { %2108 = vmatprep.subr.bf16.mxu1 %v2991_v30  ;;  %2085 = vmatprep.mubr.bf16.mxu0 %v3564_v48  ;;  %v3027_v58 = vld [vmem:[%s3508_s5 + $0x344] ss:$16 sps:$4 sm:$0xff]   ;;  %v3030_v60 = vld [vmem:[%s3508_s5 + $0x340] ss:$16 sps:$4 sm:$0xff]  }
  0x41   : > { %v3031_v61 = vld [vmem:[%s3508_s5 + $0x124] ss:$16 sps:$4 sm:$0xff]   ;;  %v3035_v63 = vld [vmem:[%s3508_s5 + $0x120] ss:$16 sps:$4 sm:$0xff]  }
  0x42   : > { %2068 = vmatpush1.bf16.msra.mxu0 %v2993_v31  ;;  %v3033_v62 = vld [vmem:[%s3508_s5 + $0x324] ss:$16 sps:$4 sm:$0xff]   ;;  %v3036_v0 = vld [vmem:[%s3508_s5 + $0x320] ss:$16 sps:$4 sm:$0xff]  }
  0x43   : > { %2109 = vmatpush1.bf16.msra.mxu1 %v2994_v32  ;;  %2069 = vmatprep.subr.bf16.mxu0 %v2995_v33  ;;  %v3037_v1 = vld [vmem:[%s3508_s5 + $0x104] ss:$16 sps:$4 sm:$0xff]   ;;  %v3041_v3 = vld [vmem:[%s3508_s5 + $0x100] ss:$16 sps:$4 sm:$0xff]  }
  0x44   : > { %2110 = vmatprep.subr.bf16.mxu1 %v2997_v34  ;;  %v3039_v2 = vld [vmem:[%s3508_s5 + $0x304] ss:$16 sps:$4 sm:$0xff]   ;;  %v3042_v4 = vld [vmem:[%s3508_s5 + $0x300] ss:$16 sps:$4 sm:$0xff]  }
  0x45   : > { %v3049_v5 = vld [vmem:[%s3508_s5 + $0x4e4] ss:$16 sps:$4 sm:$0xff]   ;;  %v3047_v10 = vld [vmem:[%s3508_s5 + $0x4e0] ss:$16 sps:$4 sm:$0xff]  }
  0x46   : > { %2070 = vmatpush2.bf16.msra.mxu0 %v2999_v35  ;;  %v3052_v6 = vld [vmem:[%s3508_s5 + $0x6e4] ss:$16 sps:$4 sm:$0xff]   ;;  %v3050_v11 = vld [vmem:[%s3508_s5 + $0x6e0] ss:$16 sps:$4 sm:$0xff]   ;;  %v3625_v35 = vld [vmem:[%s3559_s9 + $0x18] sm:$0xff] }
  0x47   : > { %2111 = vmatpush2.bf16.msra.mxu1 %v3000_v36  ;;  %2071 = vmatprep.subr.bf16.mxu0 %v3001_v37  ;;  %v3055_v12 = vld [vmem:[%s3508_s5 + $0x4c4] ss:$16 sps:$4 sm:$0xff]   ;;  %v3053_v14 = vld [vmem:[%s3508_s5 + $0x4c0] ss:$16 sps:$4 sm:$0xff]  }
  0x48   : > { %2112 = vmatprep.subr.bf16.mxu1 %v3003_v38  ;;  %v3058_v13 = vld [vmem:[%s3508_s5 + $0x6c4] ss:$16 sps:$4 sm:$0xff]   ;;  %v3056_v15 = vld [vmem:[%s3508_s5 + $0x6c0] ss:$16 sps:$4 sm:$0xff]  }
  0x49   : > { %v3061_v16 = vld [vmem:[%s3508_s5 + $0x4a4] ss:$16 sps:$4 sm:$0xff]   ;;  %v3059_v18 = vld [vmem:[%s3508_s5 + $0x4a0] ss:$16 sps:$4 sm:$0xff]  }
  0x4a   : > { %2072 = vmatpush2.bf16.msra.mxu0 %v3005_v39  ;;  %v3064_v17 = vld [vmem:[%s3508_s5 + $0x6a4] ss:$16 sps:$4 sm:$0xff]   ;;  %v3062_v19 = vld [vmem:[%s3508_s5 + $0x6a0] ss:$16 sps:$4 sm:$0xff]   ;;  %v3636_v39 = vcombine.high %v3625_v35, %v3625_v35 }
  0x4b   : > { %2113 = vmatpush2.bf16.msra.mxu1 %v3006_v40  ;;  %2073 = vmatprep.subr.bf16.mxu0 %v3007_v41  ;;  %v3067_v20 = vld [vmem:[%s3508_s5 + $0x484] ss:$16 sps:$4 sm:$0xff]   ;;  %v3065_v22 = vld [vmem:[%s3508_s5 + $0x480] ss:$16 sps:$4 sm:$0xff]  }
  0x4c   : > { %2114 = vmatprep.subr.bf16.mxu1 %v3009_v42  ;;  %v3070_v21 = vld [vmem:[%s3508_s5 + $0x684] ss:$16 sps:$4 sm:$0xff]   ;;  %v3068_v23 = vld [vmem:[%s3508_s5 + $0x680] ss:$16 sps:$4 sm:$0xff]  }
  0x4d   : > { %v3073_v24 = vld [vmem:[%s3508_s5 + $0x464] ss:$16 sps:$4 sm:$0xff]   ;;  %v3071_v26 = vld [vmem:[%s3508_s5 + $0x460] ss:$16 sps:$4 sm:$0xff]  }
  0x4e   : > { %2074 = vmatpush2.bf16.msra.mxu0 %v3011_v43  ;;  %v3076_v25 = vld [vmem:[%s3508_s5 + $0x664] ss:$16 sps:$4 sm:$0xff]   ;;  %v3074_v27 = vld [vmem:[%s3508_s5 + $0x660] ss:$16 sps:$4 sm:$0xff]  }
  0x4f   : > { %2115 = vmatpush2.bf16.msra.mxu1 %v3012_v44  ;;  %2075 = vmatprep.subr.bf16.mxu0 %v3013_v45  ;;  %v3079_v28 = vld [vmem:[%s3508_s5 + $0x444] ss:$16 sps:$4 sm:$0xff]   ;;  %v3077_v30 = vld [vmem:[%s3508_s5 + $0x440] ss:$16 sps:$4 sm:$0xff]  }
  0x50   : > { %2116 = vmatprep.subr.bf16.mxu1 %v3015_v46  ;;  %v3082_v29 = vld [vmem:[%s3508_s5 + $0x644] ss:$16 sps:$4 sm:$0xff]   ;;  %v3080_v31 = vld [vmem:[%s3508_s5 + $0x640] ss:$16 sps:$4 sm:$0xff]  }
  0x51   : > { %v3085_v32 = vld [vmem:[%s3508_s5 + $0x424] ss:$16 sps:$4 sm:$0xff]   ;;  %v3083_v36 = vld [vmem:[%s3508_s5 + $0x420] ss:$16 sps:$4 sm:$0xff]  }
  0x52   : > { %2076 = vmatpush2.bf16.msra.mxu0 %v3017_v50  ;;  %v3088_v33 = vld [vmem:[%s3508_s5 + $0x624] ss:$16 sps:$4 sm:$0xff]   ;;  %v3086_v37 = vld [vmem:[%s3508_s5 + $0x620] ss:$16 sps:$4 sm:$0xff]  }
  0x53   : > { %2117 = vmatpush2.bf16.msra.mxu1 %v3018_v51  ;;  %2077 = vmatprep.subr.bf16.mxu0 %v3019_v53  ;;  %v3622_v34 = vld [vmem:[%s3559_s9 + $0x10] sm:$0xff]  ;;  %v575_v44 = vld [vmem:[%s273_s13] sm:$0xff] }
  0x54   : > { %2118 = vmatprep.subr.bf16.mxu1 %v3021_v54  ;;  %v3632_v38 = vcombine.high %v3622_v34, %v3622_v34  ;;  %v3091_v40 = vld [vmem:[%s3508_s5 + $0x404] ss:$16 sps:$4 sm:$0xff]   ;;  %v3089_v42 = vld [vmem:[%s3508_s5 + $0x400] ss:$16 sps:$4 sm:$0xff]   ;;  %578 = vperm.xlu0 %2946, %v575_v44   ;;  %v3180_v44 = vld [vmem:[%s3508_s5 + $0x48] ss:$16 sps:$4 sm:$0xff]  }
  0x55   : > { %v3094_v41 = vld [vmem:[%s3508_s5 + $0x604] ss:$16 sps:$4 sm:$0xff]   ;;  %v3092_v43 = vld [vmem:[%s3508_s5 + $0x600] ss:$16 sps:$4 sm:$0xff]  }
  0x56   : > { %2078 = vmatpush2.bf16.msra.mxu0 %v3023_v55  ;;  %v3097_v45 = vld [vmem:[%s3508_s5 + $0x5e4] ss:$16 sps:$4 sm:$0xff]   ;;  %v3095_v47 = vld [vmem:[%s3508_s5 + $0x5e0] ss:$16 sps:$4 sm:$0xff]  }
  0x57   : > { %2119 = vmatpush2.bf16.msra.mxu1 %v3024_v56  ;;  %2079 = vmatprep.subr.bf16.mxu0 %v3025_v57  ;;  %v3100_v46 = vld [vmem:[%s3508_s5 + $0x7e4] ss:$16 sps:$4 sm:$0xff]   ;;  %v3098_v49 = vld [vmem:[%s3508_s5 + $0x7e0] ss:$16 sps:$4 sm:$0xff]  }
  0x58   : > { %2120 = vmatprep.subr.bf16.mxu1 %v3027_v58  ;;  %v3103_v50 = vld [vmem:[%s3508_s5 + $0x5c4] ss:$16 sps:$4 sm:$0xff]   ;;  %v3101_v53 = vld [vmem:[%s3508_s5 + $0x5c0] ss:$16 sps:$4 sm:$0xff]  }
  0x59   : > { %v3106_v51 = vld [vmem:[%s3508_s5 + $0x7c4] ss:$16 sps:$4 sm:$0xff]   ;;  %v3104_v54 = vld [vmem:[%s3508_s5 + $0x7c0] ss:$16 sps:$4 sm:$0xff]  }
  0x5a   : > { %2080 = vmatpush2.bf16.msra.mxu0 %v3029_v59  ;;  %v3109_v55 = vld [vmem:[%s3508_s5 + $0x5a4] ss:$16 sps:$4 sm:$0xff]   ;;  %v3107_v57 = vld [vmem:[%s3508_s5 + $0x5a0] ss:$16 sps:$4 sm:$0xff]  }
  0x5b   : > { %2121 = vmatpush2.bf16.msra.mxu1 %v3030_v60  ;;  %2081 = vmatprep.subr.bf16.mxu0 %v3031_v61  ;;  %v3112_v56 = vld [vmem:[%s3508_s5 + $0x7a4] ss:$16 sps:$4 sm:$0xff]   ;;  %v3110_v58 = vld [vmem:[%s3508_s5 + $0x7a0] ss:$16 sps:$4 sm:$0xff]  }
  0x5c   : > { %2122 = vmatprep.subr.bf16.mxu1 %v3033_v62  ;;  %v3115_v59 = vld [vmem:[%s3508_s5 + $0x584] ss:$16 sps:$4 sm:$0xff]   ;;  %v3113_v61 = vld [vmem:[%s3508_s5 + $0x580] ss:$16 sps:$4 sm:$0xff]  }
  0x5d   : > { %v3118_v60 = vld [vmem:[%s3508_s5 + $0x784] ss:$16 sps:$4 sm:$0xff]   ;;  %v3116_v62 = vld [vmem:[%s3508_s5 + $0x780] ss:$16 sps:$4 sm:$0xff]  }
  0x5e   : > { %2082 = vmatpush2.bf16.msra.mxu0 %v3035_v63  ;;  %v3121_v63 = vld [vmem:[%s3508_s5 + $0x564] ss:$16 sps:$4 sm:$0xff]  }
  0x5f   : > { %2123 = vmatpush2.bf16.msra.mxu1 %v3036_v0  ;;  %2083 = vmatprep.subr.bf16.mxu0 %v3037_v1  ;;  %v3124_v0 = vld [vmem:[%s3508_s5 + $0x764] ss:$16 sps:$4 sm:$0xff]   ;;  %v3119_v1 = vld [vmem:[%s3508_s5 + $0x560] ss:$16 sps:$4 sm:$0xff]  }
  0x60   : > { %2124 = vmatprep.subr.bf16.mxu1 %v3039_v2  ;;  %v3122_v2 = vld [vmem:[%s3508_s5 + $0x760] ss:$16 sps:$4 sm:$0xff]  }
  0x62   : > { %2084 = vmatpush2.bf16.msra.mxu0 %v3041_v3  ;;  %v3127_v3 = vld [vmem:[%s3508_s5 + $0x544] ss:$16 sps:$4 sm:$0xff]  }
  0x63   : > { %2125 = vmatpush2.bf16.msra.mxu1 %v3042_v4  ;;  %2135 = vmatprep.subr.bf16.mxu0 %v3049_v5  ;;  %v3130_v4 = vld [vmem:[%s3508_s5 + $0x744] ss:$16 sps:$4 sm:$0xff]   ;;  %v3125_v5 = vld [vmem:[%s3508_s5 + $0x540] ss:$16 sps:$4 sm:$0xff]  }
  0x64   : > { %2176 = vmatprep.subr.bf16.mxu1 %v3052_v6  ;;  %v3128_v6 = vld [vmem:[%s3508_s5 + $0x740] ss:$16 sps:$4 sm:$0xff]  }
  0x65   : > { %2086 = vmatmul.mubr.bf16.vlgmr.msra.gmra.mxu0 %v3591_v7 }
  0x66   : > { %2127 = vmatmul.mubr.bf16.vlgmr.msra.gmra.mxu1 %v3593_v8  ;;  %2136 = vmatpush1.bf16.msra.mxu0 %v3047_v10  ;;  %v3133_v10 = vld [vmem:[%s3508_s5 + $0x524] ss:$16 sps:$4 sm:$0xff]  }
  0x67   : > { %2177 = vmatpush1.bf16.msra.mxu1 %v3050_v11  ;;  %2137 = vmatprep.subr.bf16.mxu0 %v3055_v12  ;;  %v3136_v11 = vld [vmem:[%s3508_s5 + $0x724] ss:$16 sps:$4 sm:$0xff]   ;;  %v3131_v12 = vld [vmem:[%s3508_s5 + $0x520] ss:$16 sps:$4 sm:$0xff]  }
  0x68   : > { %2178 = vmatprep.subr.bf16.mxu1 %v3058_v13  ;;  %2167 = vmatprep.mubr.bf16.mxu0 %v3632_v38  ;;  %v3134_v13 = vld [vmem:[%s3508_s5 + $0x720] ss:$16 sps:$4 sm:$0xff]  }
  0x69   : > { %2208 = vmatprep.mubr.bf16.mxu1 %v3636_v39 }
  0x6a   : > { %2138 = vmatpush1.bf16.msra.mxu0 %v3053_v14  ;;  %v3139_v14 = vld [vmem:[%s3508_s5 + $0x504] ss:$16 sps:$4 sm:$0xff]  }
  0x6b   : > { %2179 = vmatpush1.bf16.msra.mxu1 %v3056_v15  ;;  %2139 = vmatprep.subr.bf16.mxu0 %v3061_v16  ;;  %v3142_v15 = vld [vmem:[%s3508_s5 + $0x704] ss:$16 sps:$4 sm:$0xff]   ;;  %v3137_v16 = vld [vmem:[%s3508_s5 + $0x500] ss:$16 sps:$4 sm:$0xff]  }
  0x6c   : > { %2180 = vmatprep.subr.bf16.mxu1 %v3064_v17  ;;  %v3140_v17 = vld [vmem:[%s3508_s5 + $0x700] ss:$16 sps:$4 sm:$0xff]  }
  0x6e   : > { %2140 = vmatpush1.bf16.msra.mxu0 %v3059_v18  ;;  %v3149_v18 = vld [vmem:[%s3508_s5 + $0x8e4] ss:$16 sps:$4 sm:$0xff]  }
  0x6f   : > { %2181 = vmatpush1.bf16.msra.mxu1 %v3062_v19  ;;  %2141 = vmatprep.subr.bf16.mxu0 %v3067_v20  ;;  %v3152_v19 = vld [vmem:[%s3508_s5 + $0xec] ss:$16 sps:$4 sm:$0xff]   ;;  %v3685_v20 = vcombine.low %v3622_v34, %v3622_v34  ;;  %v3165_v34 = vld [vmem:[%s3508_s5 + $0x880] ss:$16 sps:$4 sm:$0xff]  }
  0x70   : > { %2182 = vmatprep.subr.bf16.mxu1 %v3070_v21  ;;  %v3689_v21 = vcombine.low %v3625_v35, %v3625_v35  ;;  %v3168_v35 = vld [vmem:[%s3508_s5 + $0x88] ss:$16 sps:$4 sm:$0xff]  }
  0x72   : > { %2142 = vmatpush1.bf16.msra.mxu0 %v3065_v22  ;;  %v3147_v22 = vld [vmem:[%s3508_s5 + $0x8e0] ss:$16 sps:$4 sm:$0xff]  }
  0x73   : > { %2183 = vmatpush1.bf16.msra.mxu1 %v3068_v23  ;;  %2143 = vmatprep.subr.bf16.mxu0 %v3073_v24  ;;  %v3150_v23 = vld [vmem:[%s3508_s5 + $0xe8] ss:$16 sps:$4 sm:$0xff]   ;;  %v3155_v24 = vld [vmem:[%s3508_s5 + $0x8c4] ss:$16 sps:$4 sm:$0xff]  }
  0x74   : > { %2184 = vmatprep.subr.bf16.mxu1 %v3076_v25  ;;  %v3158_v25 = vld [vmem:[%s3508_s5 + $0xcc] ss:$16 sps:$4 sm:$0xff]  }
  0x76   : > { %2144 = vmatpush1.bf16.msra.mxu0 %v3071_v26  ;;  %v3153_v26 = vld [vmem:[%s3508_s5 + $0x8c0] ss:$16 sps:$4 sm:$0xff]  }
  0x77   : > { %2185 = vmatpush1.bf16.msra.mxu1 %v3074_v27  ;;  %2145 = vmatprep.subr.bf16.mxu0 %v3079_v28  ;;  %v3156_v27 = vld [vmem:[%s3508_s5 + $0xc8] ss:$16 sps:$4 sm:$0xff]   ;;  %v3161_v28 = vld [vmem:[%s3508_s5 + $0x8a4] ss:$16 sps:$4 sm:$0xff]  }
  0x78   : > { %2186 = vmatprep.subr.bf16.mxu1 %v3082_v29  ;;  %v3164_v29 = vld [vmem:[%s3508_s5 + $0xac] ss:$16 sps:$4 sm:$0xff]  }
  0x7a   : > { %2146 = vmatpush1.bf16.msra.mxu0 %v3077_v30  ;;  %v3159_v30 = vld [vmem:[%s3508_s5 + $0x8a0] ss:$16 sps:$4 sm:$0xff]  }
  0x7b   : > { %2187 = vmatpush1.bf16.msra.mxu1 %v3080_v31  ;;  %2147 = vmatprep.subr.bf16.mxu0 %v3085_v32  ;;  %v3162_v31 = vld [vmem:[%s3508_s5 + $0xa8] ss:$16 sps:$4 sm:$0xff]   ;;  %v3167_v32 = vld [vmem:[%s3508_s5 + $0x884] ss:$16 sps:$4 sm:$0xff]  }
  0x7c   : > { %2188 = vmatprep.subr.bf16.mxu1 %v3088_v33  ;;  %v3170_v33 = vld [vmem:[%s3508_s5 + $0x8c] ss:$16 sps:$4 sm:$0xff]  }
  0x7e   : > { %2148 = vmatpush1.bf16.msra.mxu0 %v3083_v36  ;;  %v3176_v36 = vld [vmem:[%s3508_s5 + $0x6c] ss:$16 sps:$4 sm:$0xff]  }
  0x7f   : > { %2189 = vmatpush1.bf16.msra.mxu1 %v3086_v37  ;;  %2149 = vmatprep.subr.bf16.mxu0 %v3091_v40  ;;  %v3171_v37 = vld [vmem:[%s3508_s5 + $0x860] ss:$16 sps:$4 sm:$0xff]   ;;  %v3174_v40 = vld [vmem:[%s3508_s5 + $0x68] ss:$16 sps:$4 sm:$0xff]  }
  0x80   : > { %2190 = vmatprep.subr.bf16.mxu1 %v3094_v41  ;;  %v3179_v41 = vld [vmem:[%s3508_s5 + $0x844] ss:$16 sps:$4 sm:$0xff]  }
  0x82   : > { %2150 = vmatpush1.bf16.msra.mxu0 %v3089_v42  ;;  %v3182_v42 = vld [vmem:[%s3508_s5 + $0x4c] ss:$16 sps:$4 sm:$0xff]  }
  0x83   : > { %2191 = vmatpush1.bf16.msra.mxu1 %v3092_v43  ;;  %2151 = vmatprep.subr.bf16.mxu0 %v3097_v45  ;;  %v3177_v43 = vld [vmem:[%s3508_s5 + $0x840] ss:$16 sps:$4 sm:$0xff]   ;;  %v3185_v45 = vld [vmem:[%s3508_s5 + $0x824] ss:$16 sps:$4 sm:$0xff]  }
  0x84   : > { %2192 = vmatprep.subr.bf16.mxu1 %v3100_v46  ;;  %v3188_v46 = vld [vmem:[%s3508_s5 + $0x2c] ss:$16 sps:$4 sm:$0xff]  }
  0x86   : > { %2152 = vmatpush2.bf16.msra.mxu0 %v3095_v47  ;;  %v3183_v47 = vld [vmem:[%s3508_s5 + $0x820] ss:$16 sps:$4 sm:$0xff]  }
  0x87   : > { %2193 = vmatpush2.bf16.msra.mxu1 %v3098_v49  ;;  %2153 = vmatprep.subr.bf16.mxu0 %v3103_v50  ;;  %v3186_v49 = vld [vmem:[%s3508_s5 + $0x28] ss:$16 sps:$4 sm:$0xff]   ;;  %v3191_v50 = vld [vmem:[%s3508_s5 + $0x804] ss:$16 sps:$4 sm:$0xff]  }
  0x88   : > { %2194 = vmatprep.subr.bf16.mxu1 %v3106_v51  ;;  %v3194_v51 = vld [vmem:[%s3508_s5 + $0xc] ss:$16 sps:$4 sm:$0xff]  }
  0x8a   : > { %2154 = vmatpush2.bf16.msra.mxu0 %v3101_v53  ;;  %v3189_v53 = vld [vmem:[%s3508_s5 + $0x800] ss:$16 sps:$4 sm:$0xff]  }
  0x8b   : > { %2195 = vmatpush2.bf16.msra.mxu1 %v3104_v54  ;;  %2155 = vmatprep.subr.bf16.mxu0 %v3109_v55  ;;  %v3192_v54 = vld [vmem:[%s3508_s5 + $0x8] ss:$16 sps:$4 sm:$0xff]   ;;  %v3198_v55 = vld [vmem:[%s3508_s5 + $0x1ec] ss:$16 sps:$4 sm:$0xff]  }
  0x8c   : > { %2196 = vmatprep.subr.bf16.mxu1 %v3112_v56  ;;  %v3201_v56 = vld [vmem:[%s3508_s5 + $0x2ec] ss:$16 sps:$4 sm:$0xff]  }
  0x8e   : > { %2156 = vmatpush2.bf16.msra.mxu0 %v3107_v57  ;;  %v3728_v57 = vld [vmem:[%s3559_s9 + $0x20] ss:$0 sps:$4 sm:$0xff]  }
  0x8f   : > { %2197 = vmatpush2.bf16.msra.mxu1 %v3110_v58  ;;  %2157 = vmatprep.subr.bf16.mxu0 %v3115_v59  ;;  %v3196_v58 = vld [vmem:[%s3508_s5 + $0x1e8] ss:$16 sps:$4 sm:$0xff]  }
  0x90   : > { %2198 = vmatprep.subr.bf16.mxu1 %v3118_v60  ;;  %v3199_v59 = vld [vmem:[%s3508_s5 + $0x2e8] ss:$16 sps:$4 sm:$0xff]   ;;  %v3204_v60 = vld [vmem:[%s3508_s5 + $0x1cc] ss:$16 sps:$4 sm:$0xff]  }
  0x92   : > { %2158 = vmatpush2.bf16.msra.mxu0 %v3113_v61  ;;  %v3207_v61 = vld [vmem:[%s3508_s5 + $0x2cc] ss:$16 sps:$4 sm:$0xff]  }
  0x93   : > { %2199 = vmatpush2.bf16.msra.mxu1 %v3116_v62  ;;  %2159 = vmatprep.subr.bf16.mxu0 %v3121_v63  ;;  %v3202_v62 = vld [vmem:[%s3508_s5 + $0x1c8] ss:$16 sps:$4 sm:$0xff]  }
  0x94   : > { %2200 = vmatprep.subr.bf16.mxu1 %v3124_v0  ;;  %v3205_v63 = vld [vmem:[%s3508_s5 + $0x2c8] ss:$16 sps:$4 sm:$0xff]   ;;  %v3210_v0 = vld [vmem:[%s3508_s5 + $0x1ac] ss:$16 sps:$4 sm:$0xff]  }
  0x96   : > { %2160 = vmatpush2.bf16.msra.mxu0 %v3119_v1  ;;  %v3213_v1 = vld [vmem:[%s3508_s5 + $0x2ac] ss:$16 sps:$4 sm:$0xff]  }
  0x97   : > { %2201 = vmatpush2.bf16.msra.mxu1 %v3122_v2  ;;  %2161 = vmatprep.subr.bf16.mxu0 %v3127_v3  ;;  %v3208_v2 = vld [vmem:[%s3508_s5 + $0x1a8] ss:$16 sps:$4 sm:$0xff]  }
  0x98   : > { %2202 = vmatprep.subr.bf16.mxu1 %v3130_v4  ;;  %v3211_v3 = vld [vmem:[%s3508_s5 + $0x2a8] ss:$16 sps:$4 sm:$0xff]   ;;  %v3216_v4 = vld [vmem:[%s3508_s5 + $0x18c] ss:$16 sps:$4 sm:$0xff]  }
  0x9a   : > { %2162 = vmatpush2.bf16.msra.mxu0 %v3125_v5  ;;  %v3219_v5 = vld [vmem:[%s3508_s5 + $0x28c] ss:$16 sps:$4 sm:$0xff]  }
  0x9b   : > { %2203 = vmatpush2.bf16.msra.mxu1 %v3128_v6  ;;  %2163 = vmatprep.subr.bf16.mxu0 %v3133_v10  ;;  %v3214_v6 = vld [vmem:[%s3508_s5 + $0x188] ss:$16 sps:$4 sm:$0xff]  }
  0x9c   : > { %2204 = vmatprep.subr.bf16.mxu1 %v3136_v11  ;;  %v3217_v10 = vld [vmem:[%s3508_s5 + $0x288] ss:$16 sps:$4 sm:$0xff]   ;;  %v3225_v11 = vld [vmem:[%s3508_s5 + $0x26c] ss:$16 sps:$4 sm:$0xff]  }
  0x9e   : > { %2164 = vmatpush2.bf16.msra.mxu0 %v3131_v12  ;;  %v3220_v12 = vld [vmem:[%s3508_s5 + $0x168] ss:$16 sps:$4 sm:$0xff]  }
  0x9f   : > { %2205 = vmatpush2.bf16.msra.mxu1 %v3134_v13  ;;  %2165 = vmatprep.subr.bf16.mxu0 %v3139_v14  ;;  %v3223_v13 = vld [vmem:[%s3508_s5 + $0x268] ss:$16 sps:$4 sm:$0xff]   ;;  %v3228_v14 = vld [vmem:[%s3508_s5 + $0x14c] ss:$16 sps:$4 sm:$0xff]  }
  0xa0   : > { %2206 = vmatprep.subr.bf16.mxu1 %v3142_v15  ;;  %v3231_v15 = vld [vmem:[%s3508_s5 + $0x24c] ss:$16 sps:$4 sm:$0xff]  }
  0xa2   : > { %2166 = vmatpush2.bf16.msra.mxu0 %v3137_v16  ;;  %v3226_v16 = vld [vmem:[%s3508_s5 + $0x148] ss:$16 sps:$4 sm:$0xff]  }
  0xa3   : > { %2207 = vmatpush2.bf16.msra.mxu1 %v3140_v17  ;;  %2217 = vmatprep.subr.bf16.mxu0 %v3149_v18  ;;  %v3229_v17 = vld [vmem:[%s3508_s5 + $0x248] ss:$16 sps:$4 sm:$0xff]   ;;  %v3234_v18 = vld [vmem:[%s3508_s5 + $0x12c] ss:$16 sps:$4 sm:$0xff]  }
  0xa4   : > { %2258 = vmatprep.subr.bf16.mxu1 %v3152_v19  ;;  %v3237_v19 = vld [vmem:[%s3508_s5 + $0x22c] ss:$16 sps:$4 sm:$0xff]  }
  0xa5   : > { %2168 = vmatmul.mubr.bf16.vlgmr.msra.gmra.mxu0 %v3685_v20 }
  0xa6   : > { %2209 = vmatmul.mubr.bf16.vlgmr.msra.gmra.mxu1 %v3689_v21  ;;  %2218 = vmatpush1.bf16.msra.mxu0 %v3147_v22  ;;  %v3232_v22 = vld [vmem:[%s3508_s5 + $0x128] ss:$16 sps:$4 sm:$0xff]  }
  0xa7   : > { %2259 = vmatpush1.bf16.msra.mxu1 %v3150_v23  ;;  %2219 = vmatprep.subr.bf16.mxu0 %v3155_v24  ;;  %v3235_v23 = vld [vmem:[%s3508_s5 + $0x228] ss:$16 sps:$4 sm:$0xff]   ;;  %v3240_v24 = vld [vmem:[%s3508_s5 + $0x10c] ss:$16 sps:$4 sm:$0xff]  }
  0xa8   : > { %2260 = vmatprep.subr.bf16.mxu1 %v3158_v25  ;;  %2249 = vmatprep.mubr.bf16.mxu0 %v3432_v9  ;;  %v3243_v25 = vld [vmem:[%s3508_s5 + $0x20c] ss:$16 sps:$4 sm:$0xff]  }
  0xa9   : > { %2290 = vmatprep.mubr.bf16.mxu1 %v3564_v48  ;;  %v3173_v48 = vld [vmem:[%s3508_s5 + $0x864] ss:$16 sps:$4 sm:$0xff]  }
  0xaa   : > { %2220 = vmatpush1.bf16.msra.mxu0 %v3153_v26  ;;  %v3238_v26 = vld [vmem:[%s3508_s5 + $0x108] ss:$16 sps:$4 sm:$0xff]  }
  0xab   : > { %2261 = vmatpush1.bf16.msra.mxu1 %v3156_v27  ;;  %2221 = vmatprep.subr.bf16.mxu0 %v3161_v28  ;;  %v3241_v27 = vld [vmem:[%s3508_s5 + $0x208] ss:$16 sps:$4 sm:$0xff]   ;;  %v3246_v28 = vld [vmem:[%s3508_s5 + $0x3ec] ss:$16 sps:$4 sm:$0xff]  }
  0xac   : > { %2262 = vmatprep.subr.bf16.mxu1 %v3164_v29  ;;  %v3249_v29 = vld [vmem:[%s3508_s5 + $0x4ec] ss:$16 sps:$4 sm:$0xff]  }
  0xae   : > { %2222 = vmatpush1.bf16.msra.mxu0 %v3159_v30  ;;  %v3244_v30 = vld [vmem:[%s3508_s5 + $0x3e8] ss:$16 sps:$4 sm:$0xff]  }
  0xaf   : > { %2263 = vmatpush1.bf16.msra.mxu1 %v3162_v31  ;;  %2223 = vmatprep.subr.bf16.mxu0 %v3167_v32  ;;  %v3247_v31 = vld [vmem:[%s3508_s5 + $0x4e8] ss:$16 sps:$4 sm:$0xff]   ;;  %v3252_v32 = vld [vmem:[%s3508_s5 + $0x3cc] ss:$16 sps:$4 sm:$0xff]  }
  0xb0   : > { %2264 = vmatprep.subr.bf16.mxu1 %v3170_v33  ;;  %v3255_v33 = vld [vmem:[%s3508_s5 + $0x4cc] ss:$16 sps:$4 sm:$0xff]  }
  0xb2   : > { %2224 = vmatpush1.bf16.msra.mxu0 %v3165_v34  ;;  %v3250_v34 = vld [vmem:[%s3508_s5 + $0x3c8] ss:$16 sps:$4 sm:$0xff]  }
  0xb3   : > { %2265 = vmatpush1.bf16.msra.mxu1 %v3168_v35  ;;  %2225 = vmatprep.subr.bf16.mxu0 %v3173_v48  ;;  %v3253_v35 = vld [vmem:[%s3508_s5 + $0x4c8] ss:$16 sps:$4 sm:$0xff]   ;;  %v3258_v48 = vld [vmem:[%s3508_s5 + $0x3ac] ss:$16 sps:$4 sm:$0xff]  }
  0xb4   : > { %2266 = vmatprep.subr.bf16.mxu1 %v3176_v36  ;;  %v3261_v36 = vld [vmem:[%s3508_s5 + $0x4ac] ss:$16 sps:$4 sm:$0xff]  }
  0xb6   : > { %2226 = vmatpush1.bf16.msra.mxu0 %v3171_v37  ;;  %v3256_v37 = vld [vmem:[%s3508_s5 + $0x3a8] ss:$16 sps:$4 sm:$0xff]  }
  0xb7   : > { %2267 = vmatpush1.bf16.msra.mxu1 %v3174_v40  ;;  %2227 = vmatprep.subr.bf16.mxu0 %v3179_v41  ;;  %v3264_v40 = vld [vmem:[%s3508_s5 + $0x38c] ss:$16 sps:$4 sm:$0xff]  }
  0xb8   : > { %2268 = vmatprep.subr.bf16.mxu1 %v3182_v42  ;;  %v3267_v41 = vld [vmem:[%s3508_s5 + $0x48c] ss:$16 sps:$4 sm:$0xff]   ;;  %v3262_v42 = vld [vmem:[%s3508_s5 + $0x388] ss:$16 sps:$4 sm:$0xff]  }
  0xba   : > { %2228 = vmatpush1.bf16.msra.mxu0 %v3177_v43  ;;  %v3265_v43 = vld [vmem:[%s3508_s5 + $0x488] ss:$16 sps:$4 sm:$0xff]  }
  0xbb   : > { %2269 = vmatpush1.bf16.msra.mxu1 %v3180_v44  ;;  %2229 = vmatprep.subr.bf16.mxu0 %v3185_v45  ;;  %v3273_v44 = vld [vmem:[%s3508_s5 + $0x46c] ss:$16 sps:$4 sm:$0xff]   ;;  %v3268_v45 = vld [vmem:[%s3508_s5 + $0x368] ss:$16 sps:$4 sm:$0xff]  }
  0xbc   : > { %2270 = vmatprep.subr.bf16.mxu1 %v3188_v46  ;;  %v3271_v46 = vld [vmem:[%s3508_s5 + $0x468] ss:$16 sps:$4 sm:$0xff]  }
  0xbe   : > { %2230 = vmatpush1.bf16.msra.mxu0 %v3183_v47  ;;  %v3276_v47 = vld [vmem:[%s3508_s5 + $0x34c] ss:$16 sps:$4 sm:$0xff]  }
  0xbf   : > { %2271 = vmatpush1.bf16.msra.mxu1 %v3186_v49  ;;  %2231 = vmatprep.subr.bf16.mxu0 %v3191_v50  ;;  %v3279_v49 = vld [vmem:[%s3508_s5 + $0x44c] ss:$16 sps:$4 sm:$0xff]   ;;  %v3274_v50 = vld [vmem:[%s3508_s5 + $0x348] ss:$16 sps:$4 sm:$0xff]  }
  0xc0   : > { %2272 = vmatprep.subr.bf16.mxu1 %v3194_v51  ;;  %v3277_v51 = vld [vmem:[%s3508_s5 + $0x448] ss:$16 sps:$4 sm:$0xff]  }
  0xc2   : > { %2232 = vmatpush1.bf16.msra.mxu0 %v3189_v53  ;;  %v3282_v53 = vld [vmem:[%s3508_s5 + $0x32c] ss:$16 sps:$4 sm:$0xff]  }
  0xc3   : > { %2273 = vmatpush1.bf16.msra.mxu1 %v3192_v54  ;;  %2299 = vmatprep.subr.bf16.mxu0 %v3201_v56  ;;  %v3285_v54 = vld [vmem:[%s3508_s5 + $0x42c] ss:$16 sps:$4 sm:$0xff]   ;;  %v3283_v56 = vld [vmem:[%s3508_s5 + $0x428] ss:$16 sps:$4 sm:$0xff]  }
  0xc4   : > { %2274 = vmatprep.subr.bf16.mxu1 %v3198_v55  ;;  %v3280_v55 = vld [vmem:[%s3508_s5 + $0x328] ss:$16 sps:$4 sm:$0xff]  }
  0xc5   : > { %2250 = vmatmul.mubr.bf16.vlgmr.msra.gmra.mxu0 %v3728_v57 }
  0xc6   : > { %2300 = vmatpush1.bf16.msra.mxu0 %v3199_v59  ;;  %2331 = vmatprep.mubr.bf16.mxu0 %v3569_v52  ;;  %v3222_v52 = vld [vmem:[%s3508_s5 + $0x16c] ss:$16 sps:$4 sm:$0xff]  }
  0xc7   : > { %2275 = vmatpush2.bf16.msra.mxu1 %v3196_v58  ;;  %2301 = vmatprep.subr.bf16.mxu0 %v3207_v61  ;;  %v3288_v58 = vld [vmem:[%s3508_s5 + $0x30c] ss:$16 sps:$4 sm:$0xff]   ;;  %v3289_v61 = vld [vmem:[%s3508_s5 + $0x408] ss:$16 sps:$4 sm:$0xff]  }
  0xc8   : > { %2276 = vmatprep.subr.bf16.mxu1 %v3204_v60  ;;  %v3291_v59 = vld [vmem:[%s3508_s5 + $0x40c] ss:$16 sps:$4 sm:$0xff]   ;;  %v3286_v60 = vld [vmem:[%s3508_s5 + $0x308] ss:$16 sps:$4 sm:$0xff]  }
  0xca   : > { %2302 = vmatpush1.bf16.msra.mxu0 %v3205_v63  ;;  %v3297_v63 = vld [vmem:[%s3508_s5 + $0x6ec] ss:$16 sps:$4 sm:$0xff]  }
  0xcb   : > { %2277 = vmatpush2.bf16.msra.mxu1 %v3202_v62  ;;  %2303 = vmatprep.subr.bf16.mxu0 %v3213_v1  ;;  %v3294_v62 = vld [vmem:[%s3508_s5 + $0x5ec] ss:$16 sps:$4 sm:$0xff]   ;;  %v3295_v1 = vld [vmem:[%s3508_s5 + $0x6e8] ss:$16 sps:$4 sm:$0xff]  }
  0xcc   : > { %2278 = vmatprep.subr.bf16.mxu1 %v3210_v0  ;;  %v3292_v0 = vld [vmem:[%s3508_s5 + $0x5e8] ss:$16 sps:$4 sm:$0xff]  }
  0xce   : > { %2304 = vmatpush1.bf16.msra.mxu0 %v3211_v3  ;;  %v3303_v3 = vld [vmem:[%s3508_s5 + $0x6cc] ss:$16 sps:$4 sm:$0xff]  }
  0xcf   : > { %2279 = vmatpush2.bf16.msra.mxu1 %v3208_v2  ;;  %2305 = vmatprep.subr.bf16.mxu0 %v3219_v5  ;;  %v3300_v2 = vld [vmem:[%s3508_s5 + $0x5cc] ss:$16 sps:$4 sm:$0xff]   ;;  %v3301_v5 = vld [vmem:[%s3508_s5 + $0x6c8] ss:$16 sps:$4 sm:$0xff]  }
  0xd0   : > { %2280 = vmatprep.subr.bf16.mxu1 %v3216_v4  ;;  %v3298_v4 = vld [vmem:[%s3508_s5 + $0x5c8] ss:$16 sps:$4 sm:$0xff]  }
  0xd2   : > { %2306 = vmatpush1.bf16.msra.mxu0 %v3217_v10  ;;  %v3309_v10 = vld [vmem:[%s3508_s5 + $0x6ac] ss:$16 sps:$4 sm:$0xff]  }
  0xd3   : > { %2281 = vmatpush2.bf16.msra.mxu1 %v3214_v6  ;;  %2307 = vmatprep.subr.bf16.mxu0 %v3225_v11  ;;  %v3306_v6 = vld [vmem:[%s3508_s5 + $0x5ac] ss:$16 sps:$4 sm:$0xff]  }
  0xd4   : > { %2282 = vmatprep.subr.bf16.mxu1 %v3222_v52  ;;  %v3304_v52 = vld [vmem:[%s3508_s5 + $0x5a8] ss:$16 sps:$4 sm:$0xff]   ;;  %v3312_v11 = vld [vmem:[%s3508_s5 + $0x58c] ss:$16 sps:$4 sm:$0xff]  }
  0xd6   : > { %2308 = vmatpush1.bf16.msra.mxu0 %v3223_v13  ;;  %v3310_v13 = vld [vmem:[%s3508_s5 + $0x588] ss:$16 sps:$4 sm:$0xff]  }
  0xd7   : > { %2283 = vmatpush2.bf16.msra.mxu1 %v3220_v12  ;;  %2309 = vmatprep.subr.bf16.mxu0 %v3231_v15  ;;  %v3315_v12 = vld [vmem:[%s3508_s5 + $0x68c] ss:$16 sps:$4 sm:$0xff]  }
  0xd8   : > { %2284 = vmatprep.subr.bf16.mxu1 %v3228_v14  ;;  %v3313_v14 = vld [vmem:[%s3508_s5 + $0x688] ss:$16 sps:$4 sm:$0xff]   ;;  %v3321_v15 = vld [vmem:[%s3508_s5 + $0x66c] ss:$16 sps:$4 sm:$0xff]  }
  0xda   : > { %2310 = vmatpush1.bf16.msra.mxu0 %v3229_v17  ;;  %v3319_v17 = vld [vmem:[%s3508_s5 + $0x668] ss:$16 sps:$4 sm:$0xff]  }
  0xdb   : > { %2285 = vmatpush2.bf16.msra.mxu1 %v3226_v16  ;;  %2311 = vmatprep.subr.bf16.mxu0 %v3237_v19  ;;  %v3316_v16 = vld [vmem:[%s3508_s5 + $0x568] ss:$16 sps:$4 sm:$0xff]   ;;  %v3327_v19 = vld [vmem:[%s3508_s5 + $0x64c] ss:$16 sps:$4 sm:$0xff]  }
  0xdc   : > { %2286 = vmatprep.subr.bf16.mxu1 %v3234_v18  ;;  %v3324_v18 = vld [vmem:[%s3508_s5 + $0x54c] ss:$16 sps:$4 sm:$0xff]  }
  0xde   : > { %2312 = vmatpush1.bf16.msra.mxu0 %v3235_v23  ;;  %v3325_v23 = vld [vmem:[%s3508_s5 + $0x648] ss:$16 sps:$4 sm:$0xff]  }
  0xdf   : > { %2287 = vmatpush2.bf16.msra.mxu1 %v3232_v22  ;;  %2313 = vmatprep.subr.bf16.mxu0 %v3243_v25  ;;  %v3322_v22 = vld [vmem:[%s3508_s5 + $0x548] ss:$16 sps:$4 sm:$0xff]   ;;  %v3333_v25 = vld [vmem:[%s3508_s5 + $0x62c] ss:$16 sps:$4 sm:$0xff]  }
  0xe0   : > { %2288 = vmatprep.subr.bf16.mxu1 %v3240_v24  ;;  %v3330_v24 = vld [vmem:[%s3508_s5 + $0x52c] ss:$16 sps:$4 sm:$0xff]  }
  0xe2   : > { %2314 = vmatpush1.bf16.msra.mxu0 %v3241_v27  ;;  %v3331_v27 = vld [vmem:[%s3508_s5 + $0x628] ss:$16 sps:$4 sm:$0xff]  }
  0xe3   : > { %2289 = vmatpush2.bf16.msra.mxu1 %v3238_v26  ;;  %2315 = vmatprep.subr.bf16.mxu0 %v3246_v28  ;;  %v3328_v26 = vld [vmem:[%s3508_s5 + $0x528] ss:$16 sps:$4 sm:$0xff]   ;;  %v3336_v28 = vld [vmem:[%s3508_s5 + $0x50c] ss:$16 sps:$4 sm:$0xff]  }
  0xe4   : > { %2340 = vmatprep.subr.bf16.mxu1 %v3249_v29  ;;  %v3339_v29 = vld [vmem:[%s3508_s5 + $0x60c] ss:$16 sps:$4 sm:$0xff]  }
  0xe6   : > { %2291 = vmatmul.mubr.bf16.vlgmr.msra.gmra.mxu1 %v3591_v7  ;;  %2316 = vmatpush2.bf16.msra.mxu0 %v3244_v30  ;;  %v3259_v7 = vld [vmem:[%s3508_s5 + $0x4a8] ss:$16 sps:$4 sm:$0xff]  }
  0xe7   : > { %2341 = vmatpush1.bf16.msra.mxu1 %v3247_v31  ;;  %2317 = vmatprep.subr.bf16.mxu0 %v3252_v32  ;;  %v3334_v30 = vld [vmem:[%s3508_s5 + $0x508] ss:$16 sps:$4 sm:$0xff]   ;;  %v3342_v32 = vld [vmem:[%s3508_s5 + $0x7ec] ss:$16 sps:$4 sm:$0xff]  }
  0xe8   : > { %2342 = vmatprep.subr.bf16.mxu1 %v3255_v33  ;;  %2372 = vmatprep.mubr.bf16.mxu1 %v3632_v38  ;;  %v3270_v38 = vld [vmem:[%s3508_s5 + $0x36c] ss:$16 sps:$4 sm:$0xff]   ;;  %v3337_v31 = vld [vmem:[%s3508_s5 + $0x608] ss:$16 sps:$4 sm:$0xff]  }
  0xe9   : > { %v3345_v33 = vld [vmem:[%s3508_s5 + $0x8ec] ss:$16 sps:$4 sm:$0xff]  }
  0xea   : > { %2318 = vmatpush2.bf16.msra.mxu0 %v3250_v34  ;;  %v3340_v34 = vld [vmem:[%s3508_s5 + $0x7e8] ss:$16 sps:$4 sm:$0xff]  }
  0xeb   : > { %2343 = vmatpush1.bf16.msra.mxu1 %v3253_v35  ;;  %2319 = vmatprep.subr.bf16.mxu0 %v3258_v48  ;;  %v3343_v35 = vld [vmem:[%s3508_s5 + $0x8e8] ss:$16 sps:$4 sm:$0xff]   ;;  %v3834_v48 = vpop.permute.xlu0 %578 }
  0xec   : > { %2344 = vmatprep.subr.bf16.mxu1 %v3261_v36  ;;  %v3348_v36 = vld [vmem:[%s3508_s5 + $0x7cc] ss:$16 sps:$4 sm:$0xff]  }
  0xee   : > { %2320 = vmatpush2.bf16.msra.mxu0 %v3256_v37  ;;  %v3351_v37 = vld [vmem:[%s3508_s5 + $0x8cc] ss:$16 sps:$4 sm:$0xff]  }
  0xef   : > { %2345 = vmatpush1.bf16.msra.mxu1 %v3259_v7  ;;  %2321 = vmatprep.subr.bf16.mxu0 %v3264_v40 }
  0xf0   : > { %2346 = vmatprep.subr.bf16.mxu1 %v3267_v41 }
  0xf2   : > { %2322 = vmatpush2.bf16.msra.mxu0 %v3262_v42  ;;  %v3346_v42 = vld [vmem:[%s3508_s5 + $0x7c8] ss:$16 sps:$4 sm:$0xff]  }
  0xf3   : > { %2347 = vmatpush1.bf16.msra.mxu1 %v3265_v43  ;;  %2323 = vmatprep.subr.bf16.mxu0 %v3270_v38  ;;  %v3349_v43 = vld [vmem:[%s3508_s5 + $0x8c8] ss:$16 sps:$4 sm:$0xff]  }
  0xf4   : > { %2348 = vmatprep.subr.bf16.mxu1 %v3273_v44 }
  0xf6   : > { %2324 = vmatpush2.bf16.msra.mxu0 %v3268_v45  ;;  %v3354_v45 = vld [vmem:[%s3508_s5 + $0x7ac] ss:$16 sps:$4 sm:$0xff]  }
  0xf7   : > { %2349 = vmatpush1.bf16.msra.mxu1 %v3271_v46  ;;  %2325 = vmatprep.subr.bf16.mxu0 %v3276_v47  ;;  %v3357_v46 = vld [vmem:[%s3508_s5 + $0x8ac] ss:$16 sps:$4 sm:$0xff]  }
  0xf8   : > { %2350 = vmatprep.subr.bf16.mxu1 %v3279_v49 }
  0xfa   : > { %2326 = vmatpush2.bf16.msra.mxu0 %v3274_v50 }
  0xfb   : > { %2351 = vmatpush1.bf16.msra.mxu1 %v3277_v51  ;;  %2327 = vmatprep.subr.bf16.mxu0 %v3282_v53  ;;  %v3352_v53 = vld [vmem:[%s3508_s5 + $0x7a8] ss:$16 sps:$4 sm:$0xff]  }
  0xfc   : > { %2352 = vmatprep.subr.bf16.mxu1 %v3285_v54  ;;  %v3355_v54 = vld [vmem:[%s3508_s5 + $0x8a8] ss:$16 sps:$4 sm:$0xff]  }
  0xfe   : > { %2328 = vmatpush2.bf16.msra.mxu0 %v3280_v55 }
  0xff   : > { %2353 = vmatpush1.bf16.msra.mxu1 %v3283_v56  ;;  %2329 = vmatprep.subr.bf16.mxu0 %v3288_v58  ;;  %v3360_v58 = vld [vmem:[%s3508_s5 + $0x78c] ss:$16 sps:$4 sm:$0xff]  }
 0x100   : > { %2354 = vmatprep.subr.bf16.mxu1 %v3291_v59  ;;  %v3358_v59 = vld [vmem:[%s3508_s5 + $0x788] ss:$16 sps:$4 sm:$0xff]  }
 0x102   : > { %2330 = vmatpush2.bf16.msra.mxu0 %v3286_v60  ;;  %v3361_v60 = vld [vmem:[%s3508_s5 + $0x888] ss:$16 sps:$4 sm:$0xff]  }
 0x103   : > { %2355 = vmatpush1.bf16.msra.mxu1 %v3289_v61  ;;  %2381 = vmatprep.subr.bf16.mxu0 %v3297_v63  ;;  %v3366_v61 = vld [vmem:[%s3508_s5 + $0x76c] ss:$16 sps:$4 sm:$0xff]   ;;  %v3364_v63 = vld [vmem:[%s3508_s5 + $0x768] ss:$16 sps:$4 sm:$0xff]  }
 0x104   : > { %2356 = vmatprep.subr.bf16.mxu1 %v3294_v62  ;;  %v3369_v62 = vld [vmem:[%s3508_s5 + $0x86c] ss:$16 sps:$4 sm:$0xff]  }
 0x105   : > { %2332 = vmatmul.mubr.bf16.vlgmr.msra.gmra.mxu0 %v3593_v8  ;;  %v3307_v8 = vld [vmem:[%s3508_s5 + $0x6a8] ss:$16 sps:$4 sm:$0xff]  }
 0x106   : > { %2382 = vmatpush1.bf16.msra.mxu0 %v3295_v1  ;;  %2413 = vmatprep.mubr.bf16.mxu0 %v3636_v39  ;;  %v3318_v39 = vld [vmem:[%s3508_s5 + $0x56c] ss:$16 sps:$4 sm:$0xff]  }
 0x107   : > { %2357 = vmatpush2.bf16.msra.mxu1 %v3292_v0  ;;  %2383 = vmatprep.subr.bf16.mxu0 %v3303_v3  ;;  %v3367_v0 = vld [vmem:[%s3508_s5 + $0x868] ss:$16 sps:$4 sm:$0xff]   ;;  %v3372_v1 = vld [vmem:[%s3508_s5 + $0x74c] ss:$16 sps:$4 sm:$0xff]  }
 0x108   : > { %2358 = vmatprep.subr.bf16.mxu1 %v3300_v2  ;;  %v3375_v2 = vld [vmem:[%s3508_s5 + $0x84c] ss:$16 sps:$4 sm:$0xff]   ;;  %v3370_v3 = vld [vmem:[%s3508_s5 + $0x748] ss:$16 sps:$4 sm:$0xff]  }
 0x10a   : > { %2384 = vmatpush1.bf16.msra.mxu0 %v3301_v5  ;;  %v3378_v5 = vld [vmem:[%s3508_s5 + $0x72c] ss:$16 sps:$4 sm:$0xff]  }
 0x10b   : > { %2359 = vmatpush2.bf16.msra.mxu1 %v3298_v4  ;;  %2385 = vmatprep.subr.bf16.mxu0 %v3309_v10  ;;  %v3373_v4 = vld [vmem:[%s3508_s5 + $0x848] ss:$16 sps:$4 sm:$0xff]  }
 0x10c   : > { %2360 = vmatprep.subr.bf16.mxu1 %v3306_v6  ;;  %v3381_v6 = vld [vmem:[%s3508_s5 + $0x82c] ss:$16 sps:$4 sm:$0xff]   ;;  %v3376_v10 = vld [vmem:[%s3508_s5 + $0x728] ss:$16 sps:$4 sm:$0xff]  }
 0x10e   : > { %2386 = vmatpush1.bf16.msra.mxu0 %v3307_v8  ;;  %v3384_v8 = vld [vmem:[%s3508_s5 + $0x70c] ss:$16 sps:$4 sm:$0xff]  }
 0x10f   : > { %2361 = vmatpush2.bf16.msra.mxu1 %v3304_v52  ;;  %2387 = vmatprep.subr.bf16.mxu0 %v3315_v12  ;;  %v3379_v52 = vld [vmem:[%s3508_s5 + $0x828] ss:$16 sps:$4 sm:$0xff]  }
 0x110   : > { %2362 = vmatprep.subr.bf16.mxu1 %v3312_v11  ;;  %v3387_v11 = vld [vmem:[%s3508_s5 + $0x80c] ss:$16 sps:$4 sm:$0xff]   ;;  %v3382_v12 = vld [vmem:[%s3508_s5 + $0x708] ss:$16 sps:$4 sm:$0xff]  }
 0x112   : > { %2388 = vmatpush1.bf16.msra.mxu0 %v3313_v14 }
 0x113   : > { %2363 = vmatpush2.bf16.msra.mxu1 %v3310_v13  ;;  %2389 = vmatprep.subr.bf16.mxu0 %v3321_v15  ;;  %v3385_v13 = vld [vmem:[%s3508_s5 + $0x808] ss:$16 sps:$4 sm:$0xff]  }
 0x114   : > { %2364 = vmatprep.subr.bf16.mxu1 %v3318_v39 }
 0x116   : > { %2390 = vmatpush1.bf16.msra.mxu0 %v3319_v17 }
 0x117   : > { %2365 = vmatpush2.bf16.msra.mxu1 %v3316_v16  ;;  %2391 = vmatprep.subr.bf16.mxu0 %v3327_v19 }
 0x118   : > { %2366 = vmatprep.subr.bf16.mxu1 %v3324_v18 }
 0x11a   : > { %2392 = vmatpush1.bf16.msra.mxu0 %v3325_v23 }
 0x11b   : > { %2367 = vmatpush2.bf16.msra.mxu1 %v3322_v22  ;;  %2393 = vmatprep.subr.bf16.mxu0 %v3333_v25 }
 0x11c   : > { %2368 = vmatprep.subr.bf16.mxu1 %v3330_v24 }
 0x11e   : > { %2394 = vmatpush1.bf16.msra.mxu0 %v3331_v27 }
 0x11f   : > { %2369 = vmatpush2.bf16.msra.mxu1 %v3328_v26  ;;  %2395 = vmatprep.subr.bf16.mxu0 %v3339_v29 }
 0x120   : > { %2370 = vmatprep.subr.bf16.mxu1 %v3336_v28  ;;  %v2468_v28 = vstv %s2463_s14 }
 0x122   : > { %2396 = vmatpush1.bf16.msra.mxu0 %v3337_v31 }
 0x123   : > { %2371 = vmatpush2.bf16.msra.mxu1 %v3334_v30  ;;  %2397 = vmatprep.subr.bf16.mxu0 %v3342_v32 }
 0x124   : > { %2422 = vmatprep.subr.bf16.mxu1 %v3345_v33 }
 0x125   : > { %v2087_v7 = vpop.f32.mrf.mxu0 }
 0x126   : > { %v2128_v40 = vpop.f32.mrf.mxu1  ;;  %2373 = vmatmul.mubr.bf16.vlgmr.msra.gmra.mxu1 %v3685_v20  ;;  %v2088_v41 = vadd.f32 %v2087_v7, %v3834_v48  ;;  %2398 = vmatpush2.bf16.msra.mxu0 %v3340_v34 }
 0x127   : > { %2423 = vmatpush1.bf16.msra.mxu1 %v3343_v35  ;;  %v2089_v38 = vpop.f32.mrf.mxu0  ;;  %2399 = vmatprep.subr.bf16.mxu0 %v3348_v36 }
 0x128   : > { %v2130_v44 = vpop.f32.mrf.mxu1  ;;  %2424 = vmatprep.subr.bf16.mxu1 %v3351_v37  ;;  %v2090_v47 = vadd.f32 %v2089_v38, %v3834_v48  ;;  %2454 = vmatprep.mubr.bf16.mxu1 %v3432_v9  ;;  %v2129_v20 = vadd.f32 %v2128_v40, %v2088_v41  ;;  %v3363_v9 = vld [vmem:[%s3508_s5 + $0x88c] ss:$16 sps:$4 sm:$0xff]  }
 0x129   : > { %v2091_v49 = vpop.f32.mrf.mxu0 }
 0x12a   : > { %v2132_v50 = vpop.f32.mrf.mxu1  ;;  %v2131_v51 = vadd.f32 %v2130_v44, %v2090_v47  ;;  %2400 = vmatpush2.bf16.msra.mxu0 %v3346_v42 }
 0x12b   : > { %2425 = vmatpush1.bf16.msra.mxu1 %v3349_v43  ;;  %v2092_v55 = vpop.f32.mrf.mxu0  ;;  %2401 = vmatprep.subr.bf16.mxu0 %v3354_v45 }
 0x12c   : > { %v2133_v56 = vpop.f32.mrf.mxu1  ;;  %2426 = vmatprep.subr.bf16.mxu1 %v3357_v46 }
 0x12e   : > { %2402 = vmatpush2.bf16.msra.mxu0 %v3352_v53 }
 0x12f   : > { %2427 = vmatpush1.bf16.msra.mxu1 %v3355_v54  ;;  %2403 = vmatprep.subr.bf16.mxu0 %v3360_v58 }
 0x130   : > { %2428 = vmatprep.subr.bf16.mxu1 %v3363_v9 }
 0x132   : > { %2404 = vmatpush2.bf16.msra.mxu0 %v3358_v59 }
 0x133   : > { %2429 = vmatpush1.bf16.msra.mxu1 %v3361_v60  ;;  %2405 = vmatprep.subr.bf16.mxu0 %v3366_v61 }
 0x134   : > { %2430 = vmatprep.subr.bf16.mxu1 %v3369_v62 }
 0x136   : > { %2406 = vmatpush2.bf16.msra.mxu0 %v3364_v63 }
 0x137   : > { %2431 = vmatpush1.bf16.msra.mxu1 %v3367_v0  ;;  %2407 = vmatprep.subr.bf16.mxu0 %v3372_v1 }
 0x138   : > { %2432 = vmatprep.subr.bf16.mxu1 %v3375_v2 }
 0x13a   : > { %2408 = vmatpush2.bf16.msra.mxu0 %v3370_v3 }
 0x13b   : > { %2433 = vmatpush1.bf16.msra.mxu1 %v3373_v4  ;;  %2409 = vmatprep.subr.bf16.mxu0 %v3378_v5 }
 0x13c   : > { %2434 = vmatprep.subr.bf16.mxu1 %v3381_v6 }
 0x13e   : > { %2410 = vmatpush2.bf16.msra.mxu0 %v3376_v10 }
 0x13f   : > { %2435 = vmatpush1.bf16.msra.mxu1 %v3379_v52  ;;  %2411 = vmatprep.subr.bf16.mxu0 %v3384_v8 }
 0x140   : > { %2436 = vmatprep.subr.bf16.mxu1 %v3387_v11 }
 0x142   : > { %2412 = vmatpush2.bf16.msra.mxu0 %v3382_v12 }
 0x143   : > { %2437 = vmatpush1.bf16.msra.mxu1 %v3385_v13 }
 0x145   : > { %2414 = vmatmul.mubr.bf16.vlgmr.msra.gmra.mxu0 %v3689_v21 }
 0x146   : > { %2455 = vmatmul.mubr.bf16.vlgmr.msra.gmra.mxu1 %v3728_v57 }
 0x165   : > { %v2169_v14 = vpop.f32.mrf.mxu0 }
 0x166   : > { %v2210_v39 = vpop.f32.mrf.mxu1  ;;  %v2170_v15 = vadd.f32 %v2169_v14, %v2129_v20 }
 0x167   : > { %v2171_v16 = vpop.f32.mrf.mxu0 }
 0x168   : > { %v2212_v17 = vpop.f32.mrf.mxu1  ;;  %v2211_v18 = vadd.f32 %v2210_v39, %v2170_v15  ;;  %v2172_v19 = vadd.f32 %v2171_v16, %v2131_v51 }
 0x169   : > { %v2173_v22 = vpop.f32.mrf.mxu0 }
 0x16a   : > { %v2214_v23 = vpop.f32.mrf.mxu1  ;;  %v2213_v24 = vadd.f32 %v2212_v17, %v2172_v19 }
 0x16b   : > { %v2174_v25 = vpop.f32.mrf.mxu0 }
 0x16c   : > { %v2215_v26 = vpop.f32.mrf.mxu1 }
 0x185   : > { %v2251_v27 = vpop.f32.mrf.mxu0 }
 0x186   : > { %v2252_v29 = vadd.f32 %v2251_v27, %v2211_v18 }
 0x187   : > { %v2253_v30 = vpop.f32.mrf.mxu0 }
 0x188   : > { %v2469_v21 = vmul.f32 %v2468_v28, %v2252_v29  ;;  %v2254_v31 = vadd.f32 %v2253_v30, %v2213_v24  ;;  %vm2464_vm0 = vcmp.gt.f32.partialorder %v2252_v29, 0.0 }
 0x189   : > { %v2255_v57 = vpop.f32.mrf.mxu0 }
 0x18a   : > { %vm2465_vm1 = vcmp.gt.f32.partialorder %v2254_v31, 0.0  ;;  %v2470_v32 = vmul.f32 %v2468_v28, %v2254_v31  ;;  %v2473_v34 = vsel %vm2464_vm0, %v2252_v29, %v2469_v21 }
 0x18b   : > { %v2256_v33 = vpop.f32.mrf.mxu0 }
 0x18c   : > { %v2474_v35 = vsel %vm2465_vm1, %v2254_v31, %v2470_v32 }
 0x18d   : > { %v2477_v36 = vmax.f32 %v2473_v34, %v2474_v35 }
 0x1a6   : > { %v2292_v37 = vpop.f32.mrf.mxu1 }
 0x1a7   : > { %v2293_v49 = vadd.f32 %v2292_v37, %v3834_v48 }
 0x1a8   : > { %v2294_v7 = vpop.f32.mrf.mxu1 }
 0x1a9   : > { %v2295_v50 = vadd.f32 %v2294_v7, %v3834_v48 }
 0x1aa   : > { %v2296_v40 = vpop.f32.mrf.mxu1 }
 0x1ac   : > { %v2297_v41 = vpop.f32.mrf.mxu1 }
 0x1c5   : > { %v2333_v42 = vpop.f32.mrf.mxu0 }
 0x1c6   : > { %v2334_v51 = vadd.f32 %v2333_v42, %v2293_v49 }
 0x1c7   : > { %v2335_v43 = vpop.f32.mrf.mxu0 }
 0x1c8   : > { %v2336_v53 = vadd.f32 %v2335_v43, %v2295_v50 }
 0x1c9   : > { %v2337_v38 = vpop.f32.mrf.mxu0 }
 0x1cb   : > { %v2338_v44 = vpop.f32.mrf.mxu0 }
 0x1e6   : > { %v2374_v45 = vpop.f32.mrf.mxu1 }
 0x1e7   : > { %v2375_v54 = vadd.f32 %v2374_v45, %v2334_v51 }
 0x1e8   : > { %v2376_v46 = vpop.f32.mrf.mxu1 }
 0x1e9   : > { %v2377_v58 = vadd.f32 %v2376_v46, %v2336_v53 }
 0x1ea   : > { %v2378_v47 = vpop.f32.mrf.mxu1 }
 0x1ec   : > { %v2379_v20 = vpop.f32.mrf.mxu1 }
 0x205   : > { %v2415_v55 = vpop.f32.mrf.mxu0 }
 0x206   : > { %v2456_v56 = vpop.f32.mrf.mxu1  ;;  %v2416_v9 = vadd.f32 %v2415_v55, %v2375_v54 }
 0x207   : > { %v2417_v59 = vpop.f32.mrf.mxu0 }
 0x208   : > { %v2458_v60 = vpop.f32.mrf.mxu1  ;;  %v2457_v61 = vadd.f32 %v2456_v56, %v2416_v9  ;;  %v2418_v62 = vadd.f32 %v2417_v59, %v2377_v58 }
 0x209   : > { %v2419_v63 = vpop.f32.mrf.mxu0 }
 0x20a   : > { %v2460_v0 = vpop.f32.mrf.mxu1  ;;  %vm2466_vm2 = vcmp.gt.f32.partialorder %v2457_v61, 0.0  ;;  %v2471_v1 = vmul.f32 %v2468_v28, %v2457_v61  ;;  %v2459_v2 = vadd.f32 %v2458_v60, %v2418_v62 }
 0x20b   : > { %v2420_v3 = vpop.f32.mrf.mxu0 }
 0x20c   : > { %v2461_v4 = vpop.f32.mrf.mxu1  ;;  %v2475_v48 = vsel %vm2466_vm2, %v2457_v61, %v2471_v1  ;;  %vm2467_vm3 = vcmp.gt.f32.partialorder %v2459_v2, 0.0  ;;  %v2472_v5 = vmul.f32 %v2468_v28, %v2459_v2 }
 0x20d   : > { %v2478_v6 = vmax.f32 %v2477_v36, %v2475_v48 }
 0x20e   : > { %v2476_v10 = vsel %vm2467_vm3, %v2459_v2, %v2472_v5 }
 0x20f   : > { %v2479_v52 = vmax.f32 %v2478_v6, %v2476_v10 }
 0x211   : > { %2480 = vst [vmem:[%s280_s20] sm:$0xff] %v2479_v52 }
 0x212 PF: > { %s15_s17 = sadd.s32 1, %s3429_s17   ;;  %s3894_s15 = smov %s3425_s16 }
 0x213   : > { %p12_p2 = scmp.ge.s32.totalorder %s15_s17, 5   ;;  %s3895_s16 = smov %s3897_s19 }
 0x215   :  { %14 = sbr.rel (!%p12_p2) target bundleno = 2 (0x2), region = 77 }
 0x21a   :  { %2506 = vsyncpa [#allocation3], 1 }
 0x21b   :  { %2508 = vsyncpa [#allocation3 + $0x1], 1 }

// kernel: encoder_forward.3
= control target key start
LH: loop header
LB: loop body
LE: loop exit
PB: predicated region body
PF: predicated region fallthrough
CT: control target
= control target key end

     0   :  { %11 = vsyncpa [#allocation4], 0  ;;  %s2351_s0 = inlined_call_operand.vmem [shape: bf16[3,9,2,72], index: 0, kind: input, shape index: {}]   ;;  %s2352_s1 = inlined_call_operand.vmem [shape: bf16[3,72,16], index: 1, kind: input, shape index: {}]   ;;  %s2353_s2 = inlined_call_operand.vmem [shape: f32[3,1,16], index: 2, kind: input, shape index: {}]   ;;  %s2354_s3 = inlined_call_operand.vmem [shape: f32[3], index: 3, kind: input, shape index: {}]   ;;  %s2355_s4 = inlined_call_operand.vmem [shape: f32[3,9,16,64], index: 4, kind: input, shape index: {}]   ;;  %s2356_s5 = inlined_call_operand.vmem [shape: f32[1,64], index: 5, kind: input, shape index: {}]   ;;  %s2357_s6 = inlined_call_operand.hbm [shape: f32[2,64], index: 6, kind: output, shape index: {}]  }
   0x1   :  { %12 = vsyncpa [#allocation3], 0  ;;  %s2052_s21 = smov 0  }
   0x2 LB: > { %s2058_s22 = sadd.s32 4294967295, %s2011_s21   ;;  %p1590_p0 = scmp.ge.s32.totalorder %s2011_s21, 1  ;;  %s2011_s21 = sphi %s2052_s21, %s18_s21  }
   0x3   : > { %p190_p1 = scmp.lt.s32.totalorder %s2011_s21, 4  ;;  %s203_s25 = sshll.u32 %s2354_s3, 4  ;;  %s204_s25 = int_to_ptr.vmem [resolvable:$true] %s203_s25 }
   0x4   : > { %p1937_p4 = scmp.eq.s32.totalorder %s2058_s22, 0  ;;  %s1958_s27 = scalar_lea.vmem %s204_s25, 16 }
   0x5   : > { %p2066_p3 = pnand %p1590_p0, %p190_p1  ;;  %p1959_p7 = scmp.ne.s32.totalorder %s204_s25, %s1958_s27 }
   0x6   : > { %p1966_p11 = scmp.lt.s32.totalorder %s204_s25, %s204_s25  ;;  %p1967_p12 = scmp.lt.s32.totalorder %s1958_s27, %s1958_s27 }
   0x7   : > { %p1933_p5 = pneg %p2066_p3 }
   0x8   : > { %p1968_p13 = por %p1967_p12, %p1966_p11 }
   0x9   : > { %p1934_p6 = pnand %p1937_p4, %p1933_p5 }
   0xb   : > { %p1960_p8 = pneg %p1934_p6 }
   0xd   : > { %p1961_p9 = pnand %p1960_p8, %p1959_p7 }
   0xf   : > { %p1962_p10 = pneg %p1961_p9 }
  0x11   : > { %p1969_p2 = pnand %p1968_p13, %p1962_p10 }
  0x13   : > { %1972 = shalt.err (!%p1969_p2)
}
  0x14   : > { %s2013_s28 = smov [#allocation2]   ;;  %248 = sbr.rel (%p2066_p3) target bundleno = 1185 (0x4a1), region = 44 }
  0x15   : > { %1936 = dma.vmem_to_smem (!%p1934_p6), %s204_s25, 16, %s2013_s28, [#allocation4]  }
  0x19   : > { %2002 = dma.done.wait (%p1937_p4), [#allocation4], 16  }
  0x1a   : > { %2004 = vsyncadd (%p1937_p4), [#allocation4], 4294967280 }
  0x1b   : > { %254 = sfence }
  0x1c   : > { %p286_p0 = scmp.lt.s32.totalorder %s2058_s22, 2  ;;  %v2014_v0 = vmov 0.0   ;;  %vm2015_vm0 = vmmov 0   ;;  %vm353_vm1 = vcmask 1043456   ;;  %vm349_vm2 = vcmask 588800   ;;  %s314_s18 = sld [smem:[#allocation2 + %s2058_s22]] }
  0x1d   : > { %1733 = vmatprep.subr.bf16.mxu0 %v2014_v0  ;;  %1747 = vmatprep.subr.bf16.mxu1 %v2014_v0  ;;  %vm454_vm4 = vcmask 130048   ;;  %p2359_p1 = scmp.ne.s32.totalorder %s2058_s22, 0 }
  0x1e   : > { %s2085_s29 = scalar_select %p286_p0, %s2058_s22, 2  ;;  %1743 = vmatprep.mubr.msk.bf16.mxu0 %vm2015_vm0, %v2014_v0  ;;  %1757 = vmatprep.mubr.msk.bf16.mxu1 %vm2015_vm0, %v2014_v0 }
  0x20   : > { %s1923_s30 = smul.u32 36, %s2085_s29  ;;  %s297_s23 = scalar_lea.vmem %s2353_s2, %s2085_s29 }
  0x21   : > { %s1922_s10 = smul.u32 9, %s2085_s29  ;;  %v2182_v13 = vld [vmem:[%s297_s23] ss:$0 sm:$0xff] }
  0x22   : > { %s294_s9 = scalar_lea.vmem %s2352_s1, %s1923_s30  ;;  %s1924_s11 = smul.u32 144, %s2085_s29  ;;  %v2184_v15 = vstv %s314_s18 }
  0x23   : > { %v1953_v1 = vld [vmem:[%s294_s9 + $0x20] ss:$0 sps:$4 sm:$0xff]   ;;  %v2099_v3 = vld [vmem:[%s294_s9 + $0x18] sm:$0xff]   ;;  %v2105_v4 = vld [vmem:[%s294_s9 + $0x10] sm:$0xff]   ;;  %s2126_s14 = scalar_lea.vmem %s2351_s0, %s1922_s10 }
  0x24   : > { %v2095_v2 = vsel %vm353_vm1, %v1953_v1, 0  ;;  %v2111_v5 = vld [vmem:[%s294_s9 + $0x8] sm:$0xff]   ;;  %v2119_v6 = vld [vmem:[%s294_s9] sm:$0xff]   ;;  %s2131_s17 = scalar_lea.vmem %s2355_s4, %s1924_s11 }
  0x25   : > { %1734 = vmatpush3.bf16.msra.mxu0 %v2095_v2  ;;  %1748 = vmatpush3.bf16.msra.mxu1 %v2095_v2  ;;  %v315_v7 = vld [vmem:[%s2126_s14] sm:$0x1]  ;;  %v1604_v8 = vld [vmem:[%s2126_s14 + $0x1] sm:$0x1]  ;;  %v1607_v9 = vld [vmem:[%s2131_s17 + $0x18] sm:$0xff] }
  0x26   : > { %1735 = vmatprep.subr.bf16.mxu0 %v2014_v0  ;;  %1749 = vmatprep.subr.bf16.mxu1 %v2014_v0  ;;  %v1606_v10 = vld [vmem:[%s2131_s17 + $0x10] sm:$0xff]  ;;  %v1615_v11 = vld [vmem:[%s2126_s14 + $0x3] sm:$0x1]  ;;  %v1620_v12 = vld [vmem:[%s2126_s14 + $0x4] sm:$0x1] }
  0x27   : > { %v402_v24 = vld [vmem:[%s2131_s17 + $0x8] sm:$0xff]  ;;  %v401_v29 = vld [vmem:[%s2131_s17] sm:$0xff]  ;;  %v1618_v53 = vld [vmem:[%s2131_s17 + $0x38] sm:$0xff] }
  0x28   : > { %v1610_v31 = vld [vmem:[%s2126_s14 + $0x2] sm:$0x1]  ;;  %v1613_v33 = vld [vmem:[%s2131_s17 + $0x28] sm:$0xff]  ;;  %v1617_v58 = vld [vmem:[%s2131_s17 + $0x30] sm:$0xff] }
  0x29   : > { %1736 = vmatpush3.bf16.msra.mxu0 %v2099_v3  ;;  %1750 = vmatpush3.bf16.msra.mxu1 %v2099_v3  ;;  %v1612_v38 = vld [vmem:[%s2131_s17 + $0x20] sm:$0xff]  ;;  %v1623_v59 = vld [vmem:[%s2131_s17 + $0x48] sm:$0xff] }
  0x2a   : > { %1737 = vmatprep.subr.bf16.mxu0 %v2014_v0  ;;  %1751 = vmatprep.subr.bf16.mxu1 %v2014_v0  ;;  %v1622_v62 = vld [vmem:[%s2131_s17 + $0x40] sm:$0xff] }
  0x2b   : > { %v1625_v1 = vld [vmem:[%s2126_s14 + $0x5] sm:$0x1] }
  0x2d   : > { %1738 = vmatpush3.bf16.msra.mxu0 %v2105_v4  ;;  %1752 = vmatpush3.bf16.msra.mxu1 %v2105_v4 }
  0x2e   : > { %1739 = vmatprep.subr.bf16.mxu0 %v2014_v0  ;;  %1753 = vmatprep.subr.bf16.mxu1 %v2014_v0 }
  0x31   : > { %1740 = vmatpush3.bf16.msra.mxu0 %v2111_v5  ;;  %1754 = vmatpush3.bf16.msra.mxu1 %v2111_v5 }
  0x32   : > { %1741 = vmatprep.subr.bf16.mxu0 %v2014_v0  ;;  %1755 = vmatprep.subr.bf16.mxu1 %v2014_v0 }
  0x35   : > { %1742 = vmatpush3.bf16.msra.mxu0 %v2119_v6  ;;  %1756 = vmatpush3.bf16.msra.mxu1 %v2119_v6 }
  0x36   : > { %1796 = vmatprep.subr.bf16.mxu1 %v2014_v0  ;;  %1761 = vmatprep.subr.mxu0 %v2014_v0 }
  0x38   : > { %1744 = vmatmul.mubr.msk.bf16.vlgmr.msra.gmra.mxu0 %vm349_vm2, %v315_v7  ;;  %1758 = vmatmul.mubr.msk.bf16.vlgmr.msra.gmra.mxu1 %vm349_vm2, %v1604_v8  ;;  %v1630_v7 = vld [vmem:[%s2126_s14 + $0x6] sm:$0x1]  ;;  %v1628_v8 = vld [vmem:[%s2131_s17 + $0x58] sm:$0xff] }
  0x39   : > { %1797 = vmatpush3.bf16.msra.mxu1 %v2095_v2  ;;  %1762 = vmatpush3.msra.mxu0 %v1607_v9  ;;  %v1627_v9 = vld [vmem:[%s2131_s17 + $0x50] sm:$0xff] }
  0x3a   : > { %1798 = vmatprep.subr.bf16.mxu1 %v2014_v0  ;;  %1763 = vmatprep.subr.mxu0 %v2014_v0 }
  0x3b   : > { %1765 = vmatprep.mubr.msk.f32.mxu0 %vm2015_vm0, %v2014_v0  ;;  %1806 = vmatprep.mubr.msk.bf16.mxu1 %vm2015_vm0, %v2014_v0 }
  0x3c   : > { %1764 = vmatpush3.msra.mxu0 %v1606_v10 }
  0x3d   : > { %1799 = vmatpush3.bf16.msra.mxu1 %v2099_v3  ;;  %1768 = vmatprep.subr.mxu0 %v2014_v0 }
  0x3e   : > { %1800 = vmatprep.subr.bf16.mxu1 %v2014_v0 }
  0x41   : > { %1801 = vmatpush3.bf16.msra.mxu1 %v2105_v4 }
  0x42   : > { %1802 = vmatprep.subr.bf16.mxu1 %v2014_v0 }
  0x45   : > { %1803 = vmatpush3.bf16.msra.mxu1 %v2111_v5 }
  0x46   : > { %1804 = vmatprep.subr.bf16.mxu1 %v2014_v0 }
  0x49   : > { %1805 = vmatpush3.bf16.msra.mxu1 %v2119_v6 }
  0x4a   : > { %1817 = vmatprep.subr.bf16.mxu1 %v2014_v0 }
  0x4c   : > { %1807 = vmatmul.mubr.msk.bf16.vlgmr.msra.gmra.mxu1 %vm349_vm2, %v1615_v11 }
  0x4d   : > { %1818 = vmatpush3.bf16.msra.mxu1 %v2095_v2  ;;  %1827 = vmatprep.mubr.msk.bf16.mxu1 %vm2015_vm0, %v2014_v0 }
  0x4e   : > { %1819 = vmatprep.subr.bf16.mxu1 %v2014_v0 }
  0x51   : > { %1820 = vmatpush3.bf16.msra.mxu1 %v2099_v3 }
  0x52   : > { %1821 = vmatprep.subr.bf16.mxu1 %v2014_v0 }
  0x55   : > { %1822 = vmatpush3.bf16.msra.mxu1 %v2105_v4 }
  0x56   : > { %1823 = vmatprep.subr.bf16.mxu1 %v2014_v0 }
  0x59   : > { %1824 = vmatpush3.bf16.msra.mxu1 %v2111_v5 }
  0x5a   : > { %1825 = vmatprep.subr.bf16.mxu1 %v2014_v0 }
  0x5d   : > { %1826 = vmatpush3.bf16.msra.mxu1 %v2119_v6 }
  0x5e   : > { %1852 = vmatprep.subr.mxu1 %v2014_v0 }
  0x60   : > { %1828 = vmatmul.mubr.msk.bf16.vlgmr.msra.gmra.mxu1 %vm349_vm2, %v1620_v12 }
  0x61   : > { %1856 = vmatprep.mubr.msk.f32.mxu1 %vm2015_vm0, %v2014_v0  ;;  %1853 = vmatpush3.msra.mxu1 %v1628_v8 }
  0x62   : > { %1854 = vmatprep.subr.mxu1 %v2014_v0 }
  0x63   : > { %1855 = vmatpush3.msra.mxu1 %v1627_v9 }
  0x64   : > { %1873 = vmatprep.subr.mxu1 %v2014_v0 }
  0xf8   : > { %v391_v14 = vpop.f32.mrf.mxu0  ;;  %v442_v16 = vpop.f32.mrf.mxu1 }
  0xf9   : > { %v392_v17 = vadd.f32 %v2182_v13, %v391_v14  ;;  %v443_v18 = vadd.f32 %v2182_v13, %v442_v16 }
  0xfa   : > { %v1745_v19 = vpop.f32.mrf.mxu0  ;;  %v1759_v20 = vpop.f32.mrf.mxu1 }
  0xfb   : > { %vm448_vm3 = vcmp.gt.f32.partialorder %v443_v18, 0.0  ;;  %v449_v21 = vmul.f32 %v443_v18, %v2184_v15  ;;  %v399_v25 = vmul.f32 %v2184_v15, %v392_v17  ;;  %vm397_vm5 = vcmp.gt.f32.partialorder %v392_v17, 0.0 }
  0xfc   : > { %v394_v22 = vpop.f32.mrf.mxu0  ;;  %v445_v23 = vpop.f32.mrf.mxu1 }
  0xfd   : > { %v450_v26 = vsel %vm448_vm3, %v443_v18, %v449_v21  ;;  %v400_v30 = vsel %vm397_vm5, %v392_v17, %v399_v25 }
  0xfe   : > { %v1746_v27 = vpop.f32.mrf.mxu0  ;;  %v1760_v28 = vpop.f32.mrf.mxu1  ;;  %1766 = vmatmul.mubr.msk.f32.vlgmr.msra.gmra.mxu0 %vm454_vm4, %v450_v26  ;;  %v1633_v26 = vld [vmem:[%s2131_s17 + $0x68] sm:$0xff] }
  0xff   : > { %1769 = vmatpush3.msra.mxu0 %v402_v24  ;;  %1772 = vmatprep.mubr.msk.f32.mxu0 %vm2015_vm0, %v2014_v0 }
 0x100   : > { %1770 = vmatprep.subr.mxu0 %v2014_v0 }
 0x101   : > { %1771 = vmatpush3.msra.mxu0 %v401_v29  ;;  %v1632_v29 = vld [vmem:[%s2131_s17 + $0x60] sm:$0xff] }
 0x102   : > { %1775 = vmatprep.subr.bf16.mxu0 %v2014_v0  ;;  %1773 = vmatmul.mubr.msk.f32.vlgmr.msra.gmra.mxu0 %vm454_vm4, %v400_v30 }
 0x103   : > { %1776 = vmatpush3.bf16.msra.mxu0 %v2095_v2  ;;  %1785 = vmatprep.mubr.msk.bf16.mxu0 %vm2015_vm0, %v2014_v0 }
 0x104   : > { %1777 = vmatprep.subr.bf16.mxu0 %v2014_v0 }
 0x107   : > { %1778 = vmatpush3.bf16.msra.mxu0 %v2099_v3 }
 0x108   : > { %1779 = vmatprep.subr.bf16.mxu0 %v2014_v0 }
 0x10b   : > { %1780 = vmatpush3.bf16.msra.mxu0 %v2105_v4 }
 0x10c   : > { %1781 = vmatprep.subr.bf16.mxu0 %v2014_v0  ;;  %v765_v32 = vpop.f32.mrf.mxu1 }
 0x10d   : > { %v766_v48 = vadd.f32 %v2182_v13, %v765_v32 }
 0x10e   : > { %v1808_v34 = vpop.f32.mrf.mxu1 }
 0x10f   : > { %1782 = vmatpush3.bf16.msra.mxu0 %v2111_v5  ;;  %v772_v54 = vmul.f32 %v766_v48, %v2184_v15  ;;  %vm771_vm7 = vcmp.gt.f32.partialorder %v766_v48, 0.0 }
 0x110   : > { %1783 = vmatprep.subr.bf16.mxu0 %v2014_v0  ;;  %v768_v35 = vpop.f32.mrf.mxu1 }
 0x111   : > { %v773_v60 = vsel %vm771_vm7, %v766_v48, %v772_v54 }
 0x112   : > { %v1809_v36 = vpop.f32.mrf.mxu1 }
 0x113   : > { %1784 = vmatpush3.bf16.msra.mxu0 %v2119_v6 }
 0x114   : > { %1789 = vmatprep.subr.mxu0 %v2014_v0 }
 0x116   : > { %1786 = vmatmul.mubr.msk.bf16.vlgmr.msra.gmra.mxu0 %vm349_vm2, %v1610_v31 }
 0x117   : > { %1793 = vmatprep.mubr.msk.f32.mxu0 %vm2015_vm0, %v2014_v0  ;;  %1790 = vmatpush3.msra.mxu0 %v1613_v33 }
 0x118   : > { %1791 = vmatprep.subr.mxu0 %v2014_v0 }
 0x119   : > { %1792 = vmatpush3.msra.mxu0 %v1612_v38  ;;  %v1638_v38 = vld [vmem:[%s2131_s17 + $0x78] sm:$0xff] }
 0x11a   : > { %1810 = vmatprep.subr.mxu0 %v2014_v0 }
 0x120   : > { %v890_v37 = vpop.f32.mrf.mxu1 }
 0x121   : > { %v891_v56 = vadd.f32 %v2182_v13, %v890_v37  ;;  %v1635_v37 = vld [vmem:[%s2126_s14 + $0x7] sm:$0x1] }
 0x122   : > { %v1829_v39 = vpop.f32.mrf.mxu1 }
 0x123   : > { %v897_v61 = vmul.f32 %v891_v56, %v2184_v15  ;;  %vm896_vm8 = vcmp.gt.f32.partialorder %v891_v56, 0.0 }
 0x124   : > { %v893_v40 = vpop.f32.mrf.mxu1 }
 0x125   : > { %v898_v63 = vsel %vm896_vm8, %v891_v56, %v897_v61 }
 0x126   : > { %v1830_v41 = vpop.f32.mrf.mxu1 }
 0x1be   : > { %v524_v42 = vpop.f32.mrf.mxu0 }
 0x1c0   : > { %v1767_v43 = vpop.f32.mrf.mxu0 }
 0x1c2   : > { %v597_v44 = vpop.f32.mrf.mxu0 }
 0x1c3   : > { %v2218_v45 = vadd.f32 %v597_v44, %v524_v42 }
 0x1c4   : > { %v1774_v46 = vpop.f32.mrf.mxu0 }
 0x1d6   : > { %v640_v47 = vpop.f32.mrf.mxu0 }
 0x1d7   : > { %v641_v49 = vadd.f32 %v2182_v13, %v640_v47  ;;  %v1643_v47 = vld [vmem:[%s2131_s17 + $0x88] sm:$0xff] }
 0x1d8   : > { %v1787_v50 = vpop.f32.mrf.mxu0 }
 0x1d9   : > { %vm646_vm6 = vcmp.gt.f32.partialorder %v641_v49, 0.0  ;;  %v647_v51 = vmul.f32 %v641_v49, %v2184_v15  ;;  %v1642_v50 = vld [vmem:[%s2131_s17 + $0x80] sm:$0xff] }
 0x1da   : > { %v643_v52 = vpop.f32.mrf.mxu0 }
 0x1db   : > { %v648_v55 = vsel %vm646_vm6, %v641_v49, %v647_v51 }
 0x1dc   : > { %v1788_v57 = vpop.f32.mrf.mxu0  ;;  %1794 = vmatmul.mubr.msk.f32.vlgmr.msra.gmra.mxu0 %vm454_vm4, %v648_v55 }
 0x1dd   : > { %1811 = vmatpush3.msra.mxu0 %v1618_v53  ;;  %1814 = vmatprep.mubr.msk.f32.mxu0 %vm2015_vm0, %v2014_v0 }
 0x1de   : > { %1812 = vmatprep.subr.mxu0 %v2014_v0 }
 0x1df   : > { %1813 = vmatpush3.msra.mxu0 %v1617_v58 }
 0x1e0   : > { %1831 = vmatprep.subr.mxu0 %v2014_v0  ;;  %1815 = vmatmul.mubr.msk.f32.vlgmr.msra.gmra.mxu0 %vm454_vm4, %v773_v60 }
 0x1e1   : > { %1832 = vmatpush3.msra.mxu0 %v1623_v59  ;;  %1835 = vmatprep.mubr.msk.f32.mxu0 %vm2015_vm0, %v2014_v0 }
 0x1e2   : > { %1833 = vmatprep.subr.mxu0 %v2014_v0 }
 0x1e3   : > { %1834 = vmatpush3.msra.mxu0 %v1622_v62 }
 0x1e4   : > { %1838 = vmatprep.subr.bf16.mxu0 %v2014_v0  ;;  %1836 = vmatmul.mubr.msk.f32.vlgmr.msra.gmra.mxu0 %vm454_vm4, %v898_v63 }
 0x1e5   : > { %1839 = vmatpush3.bf16.msra.mxu0 %v2095_v2  ;;  %1848 = vmatprep.mubr.msk.bf16.mxu0 %vm2015_vm0, %v2014_v0 }
 0x1e6   : > { %1840 = vmatprep.subr.bf16.mxu0 %v2014_v0 }
 0x1e9   : > { %1841 = vmatpush3.bf16.msra.mxu0 %v2099_v3 }
 0x1ea   : > { %1842 = vmatprep.subr.bf16.mxu0 %v2014_v0 }
 0x1ed   : > { %1843 = vmatpush3.bf16.msra.mxu0 %v2105_v4 }
 0x1ee   : > { %1844 = vmatprep.subr.bf16.mxu0 %v2014_v0 }
 0x1f1   : > { %1845 = vmatpush3.bf16.msra.mxu0 %v2111_v5 }
 0x1f2   : > { %1846 = vmatprep.subr.bf16.mxu0 %v2014_v0 }
 0x1f5   : > { %1847 = vmatpush3.bf16.msra.mxu0 %v2119_v6 }
 0x1f6   : > { %1859 = vmatprep.subr.bf16.mxu0 %v2014_v0 }
 0x1f8   : > { %1849 = vmatmul.mubr.msk.bf16.vlgmr.msra.gmra.mxu0 %vm349_vm2, %v1625_v1 }
 0x1f9   : > { %1860 = vmatpush3.bf16.msra.mxu0 %v2095_v2  ;;  %1869 = vmatprep.mubr.msk.bf16.mxu0 %vm2015_vm0, %v2014_v0 }
 0x1fa   : > { %1861 = vmatprep.subr.bf16.mxu0 %v2014_v0 }
 0x1fd   : > { %1862 = vmatpush3.bf16.msra.mxu0 %v2099_v3 }
 0x1fe   : > { %1863 = vmatprep.subr.bf16.mxu0 %v2014_v0 }
 0x201   : > { %1864 = vmatpush3.bf16.msra.mxu0 %v2105_v4 }
 0x202   : > { %1865 = vmatprep.subr.bf16.mxu0 %v2014_v0 }
 0x205   : > { %1866 = vmatpush3.bf16.msra.mxu0 %v2111_v5 }
 0x206   : > { %1867 = vmatprep.subr.bf16.mxu0 %v2014_v0 }
 0x209   : > { %1868 = vmatpush3.bf16.msra.mxu0 %v2119_v6 }
 0x20a   : > { %1894 = vmatprep.subr.mxu0 %v2014_v0 }
 0x20c   : > { %1870 = vmatmul.mubr.msk.bf16.vlgmr.msra.gmra.mxu0 %vm349_vm2, %v1630_v7 }
 0x20d   : > { %1898 = vmatprep.mubr.msk.f32.mxu0 %vm2015_vm0, %v2014_v0  ;;  %1895 = vmatpush3.msra.mxu0 %v1638_v38 }
 0x20e   : > { %1896 = vmatprep.subr.mxu0 %v2014_v0 }
 0x29c   : > { %v721_v10 = vpop.f32.mrf.mxu0 }
 0x29d   : > { %v725_v11 = vadd.f32 %v721_v10, %v2218_v45 }
 0x29e   : > { %v1795_v12 = vpop.f32.mrf.mxu0 }
 0x2a0   : > { %v846_v14 = vpop.f32.mrf.mxu0 }
 0x2a1   : > { %v850_v16 = vadd.f32 %v846_v14, %v725_v11 }
 0x2a2   : > { %v1816_v17 = vpop.f32.mrf.mxu0 }
 0x2a4   : > { %v971_v18 = vpop.f32.mrf.mxu0 }
 0x2a5   : > { %v975_v19 = vadd.f32 %v971_v18, %v850_v16 }
 0x2a6   : > { %v1837_v20 = vpop.f32.mrf.mxu0 }
 0x2b8   : > { %v1015_v21 = vpop.f32.mrf.mxu0 }
 0x2b9   : > { %v1016_v22 = vadd.f32 %v2182_v13, %v1015_v21 }
 0x2ba   : > { %v1850_v23 = vpop.f32.mrf.mxu0 }
 0x2bb   : > { %vm1021_vm9 = vcmp.gt.f32.partialorder %v1016_v22, 0.0  ;;  %v1022_v24 = vmul.f32 %v1016_v22, %v2184_v15 }
 0x2bc   : > { %v1018_v25 = vpop.f32.mrf.mxu0 }
 0x2bd   : > { %v1023_v27 = vsel %vm1021_vm9, %v1016_v22, %v1022_v24 }
 0x2be   : > { %v1851_v28 = vpop.f32.mrf.mxu0  ;;  %1857 = vmatmul.mubr.msk.f32.vlgmr.msra.gmra.mxu1 %vm454_vm4, %v1023_v27 }
 0x2bf   : > { %1874 = vmatpush3.msra.mxu1 %v1633_v26  ;;  %1877 = vmatprep.mubr.msk.f32.mxu1 %vm2015_vm0, %v2014_v0 }
 0x2c0   : > { %1875 = vmatprep.subr.mxu1 %v2014_v0 }
 0x2c1   : > { %1876 = vmatpush3.msra.mxu1 %v1632_v29 }
 0x2c2   : > { %1880 = vmatprep.subr.bf16.mxu1 %v2014_v0 }
 0x2cc   : > { %v1140_v30 = vpop.f32.mrf.mxu0 }
 0x2cd   : > { %v1141_v31 = vadd.f32 %v2182_v13, %v1140_v30 }
 0x2ce   : > { %v1871_v32 = vpop.f32.mrf.mxu0 }
 0x2cf   : > { %vm1146_vm10 = vcmp.gt.f32.partialorder %v1141_v31, 0.0  ;;  %v1147_v33 = vmul.f32 %v1141_v31, %v2184_v15 }
 0x2d0   : > { %v1143_v34 = vpop.f32.mrf.mxu0 }
 0x2d1   : > { %v1148_v35 = vsel %vm1146_vm10, %v1141_v31, %v1147_v33 }
 0x2d2   : > { %v1872_v36 = vpop.f32.mrf.mxu0  ;;  %1878 = vmatmul.mubr.msk.f32.vlgmr.msra.gmra.mxu1 %vm454_vm4, %v1148_v35 }
 0x2d3   : > { %1881 = vmatpush3.bf16.msra.mxu1 %v2095_v2  ;;  %1890 = vmatprep.mubr.msk.bf16.mxu1 %vm2015_vm0, %v2014_v0 }
 0x2d4   : > { %1882 = vmatprep.subr.bf16.mxu1 %v2014_v0 }
 0x2d7   : > { %1883 = vmatpush3.bf16.msra.mxu1 %v2099_v3 }
 0x2d8   : > { %1884 = vmatprep.subr.bf16.mxu1 %v2014_v0 }
 0x2db   : > { %1885 = vmatpush3.bf16.msra.mxu1 %v2105_v4 }
 0x2dc   : > { %1886 = vmatprep.subr.bf16.mxu1 %v2014_v0 }
 0x2df   : > { %1887 = vmatpush3.bf16.msra.mxu1 %v2111_v5 }
 0x2e0   : > { %1888 = vmatprep.subr.bf16.mxu1 %v2014_v0 }
 0x2e3   : > { %1889 = vmatpush3.bf16.msra.mxu1 %v2119_v6 }
 0x2e4   : > { %1901 = vmatprep.subr.bf16.mxu1 %v2014_v0 }
 0x2e6   : > { %1891 = vmatmul.mubr.msk.bf16.vlgmr.msra.gmra.mxu1 %vm349_vm2, %v1635_v37 }
 0x2e7   : > { %1902 = vmatpush3.bf16.msra.mxu1 %v2095_v2  ;;  %1911 = vmatprep.mubr.msk.bf16.mxu1 %vm2015_vm0, %v2014_v0  ;;  %v1640_v2 = vld [vmem:[%s2126_s14 + $0x8] sm:$0x1] }
 0x2e8   : > { %1903 = vmatprep.subr.bf16.mxu1 %v2014_v0 }
 0x2eb   : > { %1904 = vmatpush3.bf16.msra.mxu1 %v2099_v3  ;;  %v1637_v3 = vld [vmem:[%s2131_s17 + $0x70] sm:$0xff] }
 0x2ec   : > { %1905 = vmatprep.subr.bf16.mxu1 %v2014_v0  ;;  %1897 = vmatpush3.msra.mxu0 %v1637_v3 }
 0x2ed   : > { %1915 = vmatprep.subr.mxu0 %v2014_v0 }
 0x2ef   : > { %1906 = vmatpush3.bf16.msra.mxu1 %v2105_v4 }
 0x2f0   : > { %1907 = vmatprep.subr.bf16.mxu1 %v2014_v0 }
 0x2f3   : > { %1908 = vmatpush3.bf16.msra.mxu1 %v2111_v5 }
 0x2f4   : > { %1909 = vmatprep.subr.bf16.mxu1 %v2014_v0 }
 0x2f7   : > { %1910 = vmatpush3.bf16.msra.mxu1 %v2119_v6 }
 0x2fa   : > { %1912 = vmatmul.mubr.msk.bf16.vlgmr.msra.gmra.mxu1 %vm349_vm2, %v1640_v2 }
 0x37e   : > { %v1096_v4 = vpop.f32.mrf.mxu1 }
 0x37f   : > { %v1100_v39 = vadd.f32 %v1096_v4, %v975_v19 }
 0x380   : > { %v1858_v5 = vpop.f32.mrf.mxu1 }
 0x392   : > { %v1221_v40 = vpop.f32.mrf.mxu1 }
 0x393   : > { %v1225_v41 = vadd.f32 %v1221_v40, %v1100_v39 }
 0x394   : > { %v1879_v42 = vpop.f32.mrf.mxu1 }
 0x3a6   : > { %v1265_v6 = vpop.f32.mrf.mxu1 }
 0x3a7   : > { %v1266_v43 = vadd.f32 %v2182_v13, %v1265_v6 }
 0x3a8   : > { %v1892_v44 = vpop.f32.mrf.mxu1 }
 0x3a9   : > { %vm1271_vm11 = vcmp.gt.f32.partialorder %v1266_v43, 0.0  ;;  %v1272_v45 = vmul.f32 %v1266_v43, %v2184_v15 }
 0x3aa   : > { %v1268_v46 = vpop.f32.mrf.mxu1 }
 0x3ab   : > { %v1273_v48 = vsel %vm1271_vm11, %v1266_v43, %v1272_v45 }
 0x3ac   : > { %v1893_v49 = vpop.f32.mrf.mxu1  ;;  %1899 = vmatmul.mubr.msk.f32.vlgmr.msra.gmra.mxu0 %vm454_vm4, %v1273_v48 }
 0x3ad   : > { %1916 = vmatpush3.msra.mxu0 %v1643_v47  ;;  %1919 = vmatprep.mubr.msk.f32.mxu0 %vm2015_vm0, %v2014_v0 }
 0x3ae   : > { %1917 = vmatprep.subr.mxu0 %v2014_v0 }
 0x3af   : > { %1918 = vmatpush3.msra.mxu0 %v1642_v50 }
 0x3ba   : > { %v1390_v51 = vpop.f32.mrf.mxu1 }
 0x3bb   : > { %v1391_v52 = vadd.f32 %v2182_v13, %v1390_v51 }
 0x3bc   : > { %v1913_v53 = vpop.f32.mrf.mxu1 }
 0x3bd   : > { %vm1396_vm12 = vcmp.gt.f32.partialorder %v1391_v52, 0.0  ;;  %v1397_v54 = vmul.f32 %v1391_v52, %v2184_v15 }
 0x3be   : > { %v1393_v55 = vpop.f32.mrf.mxu1 }
 0x3bf   : > { %v1398_v56 = vsel %vm1396_vm12, %v1391_v52, %v1397_v54 }
 0x3c0   : > { %v1914_v57 = vpop.f32.mrf.mxu1  ;;  %1920 = vmatmul.mubr.msk.f32.vlgmr.msra.gmra.mxu0 %vm454_vm4, %v1398_v56 }
 0x46c   : > { %v1346_v58 = vpop.f32.mrf.mxu0 }
 0x46d   : > { %v1350_v60 = vadd.f32 %v1346_v58, %v1225_v41 }
 0x46e   : > { %v1900_v59 = vpop.f32.mrf.mxu0 }
 0x47e   : > { %1479 = sbr.rel (%p2359_p1) target bundleno = 1159 (0x487), region = 52 }
 0x480   : > { %v1471_v61 = vpop.f32.mrf.mxu0 }
 0x481   : > { %v1475_v62 = vadd.f32 %v1471_v61, %v1350_v60 }
 0x482   : > { %v1921_v63 = vpop.f32.mrf.mxu0 }
 0x483   : > { %v1646_v0 = vld [vmem:[%s2356_s5] ss:$0 sm:$0xff]  ;;  %vm1488_vm13 = vcmask 517120  }
 0x484   : > { %v1487_v13 = vadd.f32 %v1646_v0, %v1475_v62 }
 0x486   : > { %1489 = vst.msk [vmem:[#allocation5] sm:$0x3] %vm1488_vm13, %v1487_v13 }
 0x487 PF: > { %p1647_p2 = scmp.le.s32.totalorder %s2058_s22, 0 }
 0x489   : > { %1493 = sbr.rel (%p1647_p2) target bundleno = 1170 (0x492), region = 56 }
 0x48e   : > { %v1494_v15 = vld [vmem:[#allocation5] sm:$0x3]  ;;  %vm1496_vm14 = vcmask 517120  }
 0x48f   : > { %v1495_v1 = vadd.f32 %v1494_v15, %v1475_v62 }
 0x491   : > { %1497 = vst.msk [vmem:[#allocation5] sm:$0x3] %vm1496_vm14, %v1495_v1 }
 0x492 PF: > { %p1939_p3 = scmp.eq.s32.totalorder %s2058_s22, 2  ;;  %s2016_s26 = smov [#allocation5]  }
 0x493   : > { %s1505_s27 = sshll.u32 %s2016_s26, 4  ;;  %s1506_s27 = int_to_ptr.vmem [resolvable:$true] %s1505_s27 }
 0x494   : > { %s1973_s28 = scalar_lea.vmem %s1506_s27, 32  ;;  %p1980_p7 = scmp.lt.s32.totalorder %s1506_s27, %s1506_s27 }
 0x495   : > { %p1974_p4 = scmp.ne.s32.totalorder %s1506_s27, %s1973_s28  ;;  %p1981_p8 = scmp.lt.s32.totalorder %s1973_s28, %s1973_s28 }
 0x497   : > { %p1975_p5 = pnand %p1974_p4, %p1939_p3  ;;  %p1982_p9 = por %p1981_p8, %p1980_p7 }
 0x499   : > { %p1976_p6 = pneg %p1975_p5 }
 0x49b   : > { %p1983_p10 = pnand %p1982_p9, %p1976_p6 }
 0x49d   : > { %1986 = shalt.err (!%p1983_p10)
}
 0x49e   : > { %1930 = dma.vmem_to_hbm [thread:$0]  (%p1939_p3), %s1506_s27, 32, %s2357_s6, [#allocation3]  }
 0x49f   : > { %2006 = dma.done.wait (%p1939_p3), [#allocation3], 32  }
 0x4a0   : > { %2008 = vsyncadd (%p1939_p3), [#allocation3], 4294967264 }
 0x4a1 PF: > { %s18_s21 = sadd.s32 1, %s2011_s21  }
 0x4a2   : > { %p15_p11 = scmp.ge.s32.totalorder %s18_s21, 5  }
 0x4a4   :  { %17 = sbr.rel (!%p15_p11) target bundleno = 2 (0x2), region = 109 }
 0x4a9   :  { %1518 = vsyncpa [#allocation3], 1 }
 0x4aa   :  { %1520 = vsyncpa [#allocation3 + $0x1], 1 }
 0x4ab   :  { %1521 = vsyncpa [#allocation4], 1 }
 0x4ac   :  { %1523 = vsyncpa [#allocation4 + $0x1], 1 }

</bundles_post_ra>
